<compile_context>
chip_gen: v7x
topology: tpu7x:2x2x1
jax: 0.10.0
libtpu: 0.0.40
codegen_flags: <defaults>
</compile_context>

<pallas_src>
import jax
import jax.numpy as jnp
from jax import lax
from jax.experimental import pallas as pl
from jax.experimental.pallas import tpu as pltpu

IMPOSSIBLE = -1000000.0
_NEG_FILL = -1e30
_HIGH = lax.Precision.HIGHEST  # reference only


def _round_up(x, m):
    return ((x + m - 1) // m) * m


def _dot(a, b):
    # (M, K) @ (K, N) -> (M, N); bf16 operands, f32 accumulation on the MXU.
    return lax.dot_general(a, b, (((1,), (0,)), ((), ())),
                           preferred_element_type=jnp.float32)


def _dot_nt(a, b):
    # (M, K) x (N, K) -> (M, N); contraction over the last dims.
    return lax.dot_general(a, b, (((1,), (1,)), ((), ())),
                           preferred_element_type=jnp.float32)


def normalizer_kernel(words_ref, meta_ref, frag_ref, w_ref, b_ref, ml_ref,
                      mlsq_ref, l2m_ref, mls_ref, err_ref, gold_ref,
                      pooled_acc):
    t = pl.program_id(1)
    nt = pl.num_programs(1)

    F = meta_ref.shape[1]
    TT = words_ref.shape[1]

    meta = meta_ref[0]                       # (F, 8) int32 packed span metadata
    begin = meta[:, 0:1]                     # (F, 1)
    end = meta[:, 1:2]                       # (F, 1), inclusive

    # ---- running span max over the current T chunk --------------------------
    @pl.when(t == 0)
    def _():
        pooled_acc[...] = jnp.full_like(pooled_acc, _NEG_FILL)

    chunk = words_ref[0].astype(jnp.float32)     # (TT, D) bf16 -> f32
    t0 = t * TT
    acc = pooled_acc[...]
    # Small static chunk: unrolled VPU loop; no (F, TT, D) temporary and no
    # cross-layout mask broadcast (mask stays (F,1), rows stay (1,D)).
    for j in range(TT):
        tok = t0 + j
        in_span = (begin <= tok) & (tok <= end)              # (F, 1) bool
        row = chunk[j:j + 1, :]                              # (1, D)
        acc = jnp.maximum(acc, jnp.where(in_span, row, _NEG_FILL))
    pooled_acc[...] = acc

    # ---- classifier / multilabel scores / loss on the last chunk ------------
    @pl.when(t == nt - 1)
    def _():
        pooled = pooled_acc[...]
        # Spans that never selected a token (empty / garbage masked spans)
        # still hold -1e30; clamp to 0 so the matmul can't overflow -> NaN.
        pooled = jnp.where(pooled <= _NEG_FILL * 0.5, 0.0, pooled)
        pooled_bf = pooled.astype(jnp.bfloat16)

        scores = _dot(pooled_bf, w_ref[...]) + b_ref[...]            # (F, LP) f32
        mls = _dot_nt(scores.astype(jnp.bfloat16), ml_ref[...])      # (F, MP) f32

        # allowed-multilabel gather as a one-hot MXU matmul (exact for 0/1).
        lab = meta[:, 2:3]                                           # (F, 1)
        nner = l2m_ref.shape[0]
        ner_iota = lax.broadcasted_iota(jnp.int32, (F, nner), 1)
        onehot = (ner_iota == lab).astype(jnp.bfloat16)              # (F, NNERP)
        allowed = _dot(onehot, l2m_ref[...]) > 0.5                   # (F, MP)

        mls_masked = jnp.where(allowed, mls, IMPOSSIBLE)
        mls_ref[0] = mls_masked                                      # lane-dense store

        # gold one-hot via squared distance (exact for 0/1 integer labels;
        # padded multilabel rows are filled with -1 so they can never match).
        frag = frag_ref[0]                                           # (F, LP) bf16
        frag_f = frag.astype(jnp.float32)
        frag_sq = jnp.sum(frag_f * frag_f, axis=-1, keepdims=True)   # (F, 1)
        d2 = frag_sq + mlsq_ref[...] - 2.0 * _dot_nt(frag, ml_ref[...])
        gold = (d2 < 0.5).astype(jnp.float32)                        # (F, MP)
        gold_ref[0] = gold

        # log-softmax cross-entropy over the (padded) multilabel axis; padded
        # rows carry IMPOSSIBLE and gold 0, so they contribute exp(-1e6) ~ 0.
        mx = jnp.max(mls_masked, axis=-1, keepdims=True)
        sh = mls_masked - mx
        lse = jnp.log(jnp.sum(jnp.exp(sh), axis=-1, keepdims=True))
        err = -jnp.sum((sh - lse) * gold, axis=-1, keepdims=True)    # (F, 1)
        maskf = meta[:, 3:4].astype(jnp.float32)
        # TODO(synk): err is a narrow masked store; at production F pack it
        # into a lane-dense (B, F_pad) layout or a spare column of mls.
        err_ref[0] = err * maskf                    # zero at masked spans


def normalizer_forward(params, words_embed, spans_begin, spans_end, spans_label,
                       spans_mask, fragments_label, *, t_chunk=16):
    B, T, D = words_embed.shape
    F = spans_begin.shape[1]
    ml = params["multilabels"]
    M, L = ml.shape
    l2m = params["ner_label_to_multilabels"]
    NNER = l2m.shape[0]

    # Lane-dense padded sizes. TODO(synk): prefer 256 for LP/MP on v6e/v7x at
    # production sizes to fill the 256-wide MXU.
    LP = _round_up(max(L, 128), 128)
    MP = _round_up(max(M, 128), 128)
    NNERP = _round_up(NNER, 8)

    # multilabels padded: extra L columns 0 (no effect on scores/gold), extra
    # M rows -1 so they never equal a 0/1 fragment-label vector.
    ml_p = jnp.full((MP, LP), -1.0, jnp.float32)
    ml_p = ml_p.at[:M, :].set(0.0).at[:M, :L].set(ml.astype(jnp.float32))
    mlsq = jnp.sum(ml_p * ml_p, axis=-1).reshape(1, MP)

    l2m_p = jnp.zeros((NNERP, MP), jnp.float32)
    l2m_p = l2m_p.at[:NNER, :M].set(l2m.astype(jnp.float32))

    w_p = jnp.zeros((D, LP), jnp.float32)
    w_p = w_p.at[:, :L].set(params["cls_w"].astype(jnp.float32).T)
    b_p = jnp.zeros((1, LP), jnp.float32)
    b_p = b_p.at[:, :L].set(params["cls_b"].astype(jnp.float32).reshape(1, L))

    frag_p = jnp.zeros((B, F, LP), jnp.float32)
    frag_p = frag_p.at[:, :, :L].set(fragments_label.astype(jnp.float32))

    # span metadata packed into a single small int32 block:
    # columns = [begin, end(inclusive), ner_label, mask, 0, 0, 0, 0]
    meta = jnp.zeros((B, F, 8), jnp.int32)
    meta = meta.at[:, :, 0].set(spans_begin.astype(jnp.int32))
    meta = meta.at[:, :, 1].set(spans_end.astype(jnp.int32))
    meta = meta.at[:, :, 2].set(spans_label.astype(jnp.int32))
    meta = meta.at[:, :, 3].set(spans_mask.astype(jnp.int32))

    # words streamed in bf16; T padded to a multiple of the chunk size (padded
    # tokens have index >= T and are never inside any span).
    TT = t_chunk
    Tp = _round_up(T, TT)
    NT = Tp // TT
    words_bf = jnp.zeros((B, Tp, D), jnp.bfloat16)
    words_bf = words_bf.at[:, :T, :].set(words_embed.astype(jnp.bfloat16))

    mls_p, err, gold_p = pl.pallas_call(
        normalizer_kernel,
        out_shape=(jax.ShapeDtypeStruct((B, F, MP), jnp.float32),
                   jax.ShapeDtypeStruct((B, F, 1), jnp.float32),
                   jax.ShapeDtypeStruct((B, F, MP), jnp.float32)),
        grid_spec=pltpu.PrefetchScalarGridSpec(
            num_scalar_prefetch=0,
            grid=(B, NT),
            in_specs=[
                pl.BlockSpec((1, TT, D), lambda b, t: (b, t, 0)),    # words (bf16)
                pl.BlockSpec((1, F, 8), lambda b, t: (b, 0, 0)),     # packed span meta
                pl.BlockSpec((1, F, LP), lambda b, t: (b, 0, 0)),    # fragments_label
                pl.BlockSpec((D, LP), lambda b, t: (0, 0)),          # classifier W^T
                pl.BlockSpec((1, LP), lambda b, t: (0, 0)),          # classifier b
                pl.BlockSpec((MP, LP), lambda b, t: (0, 0)),         # multilabels
                pl.BlockSpec((1, MP), lambda b, t: (0, 0)),          # |multilabel|^2
                pl.BlockSpec((NNERP, MP), lambda b, t: (0, 0)),      # ner -> allowed
            ],
            out_specs=(pl.BlockSpec((1, F, MP), lambda b, t: (b, 0, 0)),
                       pl.BlockSpec((1, F, 1), lambda b, t: (b, 0, 0)),
                       pl.BlockSpec((1, F, MP), lambda b, t: (b, 0, 0))),
            scratch_shapes=[pltpu.VMEM((F, D), jnp.float32)],        # running max
        ),
        compiler_params=pltpu.CompilerParams(
            dimension_semantics=("parallel", "arbitrary")),
        # TODO(synk): at production sizes set vmem_limit_bytes explicitly and
        # re-derive TT / F tiles separately for v7x (64 MiB VMEM) vs v5e/v6e
        # (128 MiB); add pipeline_mode=pl.Buffered(3) on words only if the DMA
        # is exposed after T-tiling.
    )(words_bf, meta, frag_p.astype(jnp.bfloat16), w_p.astype(jnp.bfloat16),
      b_p, ml_p.astype(jnp.bfloat16), mlsq, l2m_p.astype(jnp.bfloat16))

    multilabel_scores = mls_p[:, :, :M]
    gold_outputs = gold_p[:, :, :M] > 0.5       # computed in-kernel, padding sliced
    mention_err = err[..., 0]                   # (B, F), zeros at masked spans
    loss = jnp.sum(mention_err)
    # TODO(synk): PyTorch returns the ragged mention_err[spans_mask]; returned
    # dense (zeros at masked spans) so the summed loss is identical.
    return {
        "prediction": fragments_label,
        "loss": loss,
        "mention_err": mention_err,
        "multilabel_scores": multilabel_scores,
        "gold_outputs": gold_outputs,
    }


def reference_forward(params, words_embed, spans_begin, spans_end, spans_label,
                      spans_mask, fragments_label):
    # Pure-JAX f32 mirror of the PyTorch forward (return_loss=True path).
    B, T, D = words_embed.shape
    ml = params["multilabels"].astype(jnp.float32)
    t = jnp.arange(T)
    in_span = ((t[None, None, :] >= spans_begin[:, :, None]) &
               (t[None, None, :] <= spans_end[:, :, None]))             # (B, F, T)
    gathered = jnp.where(in_span[..., None], words_embed[:, None, :, :], _NEG_FILL)
    pooled = jnp.max(gathered, axis=2)                                   # (B, F, D)
    scores = jnp.einsum('bfd,ld->bfl', pooled, params["cls_w"],
                        precision=_HIGH) + params["cls_b"]
    mls = jnp.einsum('bfl,ml->bfm', scores, ml, precision=_HIGH)
    allowed = params["ner_label_to_multilabels"][spans_label]            # (B, F, M)
    mls = jnp.where(allowed, mls, IMPOSSIBLE)
    gold = jnp.all(fragments_label[:, :, None, :] ==
                   params["multilabels"][None, None, :, :], axis=-1)
    logp = jax.nn.log_softmax(mls, axis=-1)
    mention_err = -jnp.sum(logp * gold.astype(jnp.float32), axis=-1)
    mention_err = jnp.where(spans_mask, mention_err, 0.0)
    loss = jnp.sum(mention_err)
    return mls, mention_err, loss, gold


if __name__ == "__main__":
    B, T, D = 2, 32, 32      # batch, seq, hidden (input_size)
    F = 8                    # spans (fragments) per sample
    L = 6                    # labels per multilabel vector (multilabels.shape[1])
    M = 5                    # number of multilabel rows
    NNER = 4                 # number of ner label ids

    key = jax.random.PRNGKey(0)
    k = jax.random.split(key, 8)

    words = jax.random.normal(k[0], (B, T, D), dtype=jnp.float32)
    cls_w = jax.random.normal(k[1], (L, D), dtype=jnp.float32) * 0.1
    cls_b = jax.random.normal(k[2], (L,), dtype=jnp.float32) * 0.1

    # M distinct binary multilabel rows over L label bits.
    multilabels = ((jnp.arange(M)[:, None] >> jnp.arange(L)[None, :]) & 1).astype(jnp.int32)

    l2m = jax.random.bernoulli(k[3], 0.6, (NNER, M))

    spans_begin = jax.random.randint(k[4], (B, F), 0, T - 4)
    span_len = jax.random.randint(k[5], (B, F), 1, 4)
    spans_end = spans_begin + span_len - 1
    spans_label = jax.random.randint(k[6], (B, F), 0, NNER)
    spans_mask = jnp.ones((B, F), dtype=bool).at[1, -1].set(False).at[0, 0].set(False)

    gold_idx = jax.random.randint(k[7], (B, F), 0, M)
    # keep the gold multilabel allowed for each span's ner label (finite loss)
    l2m = l2m.at[spans_label.reshape(-1), gold_idx.reshape(-1)].set(True)
    fragments_label = multilabels[gold_idx]                 # (B, F, L)

    params = {"cls_w": cls_w, "cls_b": cls_b,
              "multilabels": multilabels,
              "ner_label_to_multilabels": l2m}

    out = normalizer_forward(params, words, spans_begin, spans_end,
                             spans_label, spans_mask, fragments_label)
    jax.block_until_ready(out)

    mls_ref, err_ref, loss_ref, gold_ref = reference_forward(
        params, words, spans_begin, spans_end, spans_label, spans_mask,
        fragments_label)

    # bf16 MXU operands (per perf review) -> 5e-2 tolerance on the real-valued
    # outputs; allowed mask / gold one-hot / IMPOSSIBLE masking stay exact.
    assert jnp.array_equal(out["gold_outputs"], gold_ref), "gold_outputs mismatch"
    assert jnp.allclose(out["multilabel_scores"], mls_ref, rtol=5e-2, atol=5e-2), \
        "multilabel_scores mismatch"
    assert jnp.allclose(out["mention_err"], err_ref, rtol=5e-2, atol=5e-2), \
        "mention_err mismatch"
    assert jnp.allclose(out["loss"], loss_ref, rtol=2e-2, atol=1e-1), "loss mismatch"

    print("KERNEL_OK")
</pallas_src>

<mosaic_0001>
module attributes {stable_mosaic.version = 11 : i64} {
  func.func @normalizer_kernel(%arg0: i32, %arg1: i32, %arg2: memref<1x16x32xbf16, #tpu.memory_space<vmem>>, %arg3: memref<1x8x8xi32, #tpu.memory_space<vmem>>, %arg4: memref<1x8x128xbf16, #tpu.memory_space<vmem>>, %arg5: memref<32x128xbf16, #tpu.memory_space<vmem>>, %arg6: memref<1x128xf32, #tpu.memory_space<vmem>>, %arg7: memref<128x128xbf16, #tpu.memory_space<vmem>>, %arg8: memref<1x128xf32, #tpu.memory_space<vmem>>, %arg9: memref<8x128xbf16, #tpu.memory_space<vmem>>, %arg10: memref<1x8x128xf32, #tpu.memory_space<vmem>>, %arg11: memref<1x8x1xf32, #tpu.memory_space<vmem>>, %arg12: memref<1x8x128xf32, #tpu.memory_space<vmem>>, %arg13: memref<8x32xf32, #tpu.memory_space<vmem>>) attributes {dimension_semantics = [#tpu.dimension_semantics<parallel>, #tpu.dimension_semantics<arbitrary>], iteration_bounds = array<i64: 2, 2>, scalar_prefetch = 0 : i64, scratch_operands = 1 : i64, tpu.core_type = #tpu.core_type<tc>, window_params = [{transform_indices = @transform_0, window_bounds = array<i64: 1, 16, 32>}, {transform_indices = @transform_1, window_bounds = array<i64: 1, 8, 8>}, {transform_indices = @transform_2, window_bounds = array<i64: 1, 8, 128>}, {pipeline_mode = #tpu.pipeline_mode<synchronous>, transform_indices = @transform_3, window_bounds = array<i64: 32, 128>}, {pipeline_mode = #tpu.pipeline_mode<synchronous>, transform_indices = @transform_4, window_bounds = array<i64: 1, 128>}, {pipeline_mode = #tpu.pipeline_mode<synchronous>, transform_indices = @transform_5, window_bounds = array<i64: 128, 128>}, {pipeline_mode = #tpu.pipeline_mode<synchronous>, transform_indices = @transform_6, window_bounds = array<i64: 1, 128>}, {pipeline_mode = #tpu.pipeline_mode<synchronous>, transform_indices = @transform_7, window_bounds = array<i64: 8, 128>}, {transform_indices = @transform_8, window_bounds = array<i64: 1, 8, 128>}, {transform_indices = @transform_9, window_bounds = array<i64: 1, 8, 1>}, {transform_indices = @transform_10, window_bounds = array<i64: 1, 8, 128>}]} {
    %c0 = arith.constant 0 : index
    %c0_0 = arith.constant 0 : index
    %c0_1 = arith.constant 0 : index
    %0 = vector.load %arg3[%c0, %c0_0, %c0_1] : memref<1x8x8xi32, #tpu.memory_space<vmem>>, vector<1x8x8xi32>
    %1 = vector.shape_cast %0 : vector<1x8x8xi32> to vector<8x8xi32>
    %2 = vector.extract_strided_slice %1 {offsets = [0, 0], sizes = [8, 1], strides = [1, 1]} : vector<8x8xi32> to vector<8x1xi32>
    %3 = vector.extract_strided_slice %1 {offsets = [0, 1], sizes = [8, 1], strides = [1, 1]} : vector<8x8xi32> to vector<8x1xi32>
    %c0_i32 = arith.constant 0 : i32
    %4 = arith.cmpi eq, %arg1, %c0_i32 : i32
    %5 = arith.extui %4 : i1 to i32
    %c0_i32_2 = arith.constant 0 : i32
    %6 = arith.cmpi ne, %5, %c0_i32_2 : i32
    scf.if %6 {
      %cst_28 = arith.constant -1.000000e+30 : f32
      %240 = vector.broadcast %cst_28 : f32 to vector<8x32xf32>
      %c0_29 = arith.constant 0 : index
      %c0_30 = arith.constant 0 : index
      %241 = vector.load %arg13[%c0_29, %c0_30] : memref<8x32xf32, #tpu.memory_space<vmem>>, vector<8x32xf32>
      tpu.vector_store %arg13[%c0_29, %c0_30], %240 {strides = array<i32>} : memref<8x32xf32, #tpu.memory_space<vmem>>, vector<8x32xf32>,
    } else {
    }
    %c0_3 = arith.constant 0 : index
    %c0_4 = arith.constant 0 : index
    %c0_5 = arith.constant 0 : index
    %7 = vector.load %arg2[%c0_3, %c0_4, %c0_5] : memref<1x16x32xbf16, #tpu.memory_space<vmem>>, vector<1x16x32xbf16>
    %8 = vector.shape_cast %7 : vector<1x16x32xbf16> to vector<16x32xbf16>
    %9 = arith.extf %8 : vector<16x32xbf16> to vector<16x32xf32>
    %c16_i32 = arith.constant 16 : i32
    %10 = arith.muli %arg1, %c16_i32 : i32
    %c0_6 = arith.constant 0 : index
    %c0_7 = arith.constant 0 : index
    %11 = vector.load %arg13[%c0_6, %c0_7] : memref<8x32xf32, #tpu.memory_space<vmem>>, vector<8x32xf32>
    %c0_i32_8 = arith.constant 0 : i32
    %12 = arith.addi %10, %c0_i32_8 : i32
    %13 = vector.broadcast %12 : i32 to vector<8x1xi32>
    %14 = arith.cmpi sle, %2, %13 : vector<8x1xi32>
    %15 = vector.broadcast %12 : i32 to vector<8x1xi32>
    %16 = arith.cmpi sle, %15, %3 : vector<8x1xi32>
    %17 = arith.andi %14, %16 : vector<8x1xi1>
    %18 = vector.extract_strided_slice %9 {offsets = [0, 0], sizes = [1, 32], strides = [1, 1]} : vector<16x32xf32> to vector<1x32xf32>
    %cst = arith.constant -1.000000e+30 : f32
    %19 = vector.shape_cast %17 : vector<8x1xi1> to vector<8x1xi1>
    %20 = vector.broadcast %19 : vector<8x1xi1> to vector<8x32xi1>
    %21 = vector.shape_cast %18 : vector<1x32xf32> to vector<1x32xf32>
    %22 = vector.broadcast %21 : vector<1x32xf32> to vector<8x32xf32>
    %23 = vector.broadcast %cst : f32 to vector<8x32xf32>
    %24 = arith.select %20, %22, %23 : vector<8x32xi1>, vector<8x32xf32>
    %25 = arith.maximumf %11, %24 : vector<8x32xf32>
    %c1_i32 = arith.constant 1 : i32
    %26 = arith.addi %10, %c1_i32 : i32
    %27 = vector.broadcast %26 : i32 to vector<8x1xi32>
    %28 = arith.cmpi sle, %2, %27 : vector<8x1xi32>
    %29 = vector.broadcast %26 : i32 to vector<8x1xi32>
    %30 = arith.cmpi sle, %29, %3 : vector<8x1xi32>
    %31 = arith.andi %28, %30 : vector<8x1xi1>
    %32 = vector.extract_strided_slice %9 {offsets = [1, 0], sizes = [1, 32], strides = [1, 1]} : vector<16x32xf32> to vector<1x32xf32>
    %cst_9 = arith.constant -1.000000e+30 : f32
    %33 = vector.shape_cast %31 : vector<8x1xi1> to vector<8x1xi1>
    %34 = vector.broadcast %33 : vector<8x1xi1> to vector<8x32xi1>
    %35 = vector.shape_cast %32 : vector<1x32xf32> to vector<1x32xf32>
    %36 = vector.broadcast %35 : vector<1x32xf32> to vector<8x32xf32>
    %37 = vector.broadcast %cst_9 : f32 to vector<8x32xf32>
    %38 = arith.select %34, %36, %37 : vector<8x32xi1>, vector<8x32xf32>
    %39 = arith.maximumf %25, %38 : vector<8x32xf32>
    %c2_i32 = arith.constant 2 : i32
    %40 = arith.addi %10, %c2_i32 : i32
    %41 = vector.broadcast %40 : i32 to vector<8x1xi32>
    %42 = arith.cmpi sle, %2, %41 : vector<8x1xi32>
    %43 = vector.broadcast %40 : i32 to vector<8x1xi32>
    %44 = arith.cmpi sle, %43, %3 : vector<8x1xi32>
    %45 = arith.andi %42, %44 : vector<8x1xi1>
    %46 = vector.extract_strided_slice %9 {offsets = [2, 0], sizes = [1, 32], strides = [1, 1]} : vector<16x32xf32> to vector<1x32xf32>
    %cst_10 = arith.constant -1.000000e+30 : f32
    %47 = vector.shape_cast %45 : vector<8x1xi1> to vector<8x1xi1>
    %48 = vector.broadcast %47 : vector<8x1xi1> to vector<8x32xi1>
    %49 = vector.shape_cast %46 : vector<1x32xf32> to vector<1x32xf32>
    %50 = vector.broadcast %49 : vector<1x32xf32> to vector<8x32xf32>
    %51 = vector.broadcast %cst_10 : f32 to vector<8x32xf32>
    %52 = arith.select %48, %50, %51 : vector<8x32xi1>, vector<8x32xf32>
    %53 = arith.maximumf %39, %52 : vector<8x32xf32>
    %c3_i32 = arith.constant 3 : i32
    %54 = arith.addi %10, %c3_i32 : i32
    %55 = vector.broadcast %54 : i32 to vector<8x1xi32>
    %56 = arith.cmpi sle, %2, %55 : vector<8x1xi32>
    %57 = vector.broadcast %54 : i32 to vector<8x1xi32>
    %58 = arith.cmpi sle, %57, %3 : vector<8x1xi32>
    %59 = arith.andi %56, %58 : vector<8x1xi1>
    %60 = vector.extract_strided_slice %9 {offsets = [3, 0], sizes = [1, 32], strides = [1, 1]} : vector<16x32xf32> to vector<1x32xf32>
    %cst_11 = arith.constant -1.000000e+30 : f32
    %61 = vector.shape_cast %59 : vector<8x1xi1> to vector<8x1xi1>
    %62 = vector.broadcast %61 : vector<8x1xi1> to vector<8x32xi1>
    %63 = vector.shape_cast %60 : vector<1x32xf32> to vector<1x32xf32>
    %64 = vector.broadcast %63 : vector<1x32xf32> to vector<8x32xf32>
    %65 = vector.broadcast %cst_11 : f32 to vector<8x32xf32>
    %66 = arith.select %62, %64, %65 : vector<8x32xi1>, vector<8x32xf32>
    %67 = arith.maximumf %53, %66 : vector<8x32xf32>
    %c4_i32 = arith.constant 4 : i32
    %68 = arith.addi %10, %c4_i32 : i32
    %69 = vector.broadcast %68 : i32 to vector<8x1xi32>
    %70 = arith.cmpi sle, %2, %69 : vector<8x1xi32>
    %71 = vector.broadcast %68 : i32 to vector<8x1xi32>
    %72 = arith.cmpi sle, %71, %3 : vector<8x1xi32>
    %73 = arith.andi %70, %72 : vector<8x1xi1>
    %74 = vector.extract_strided_slice %9 {offsets = [4, 0], sizes = [1, 32], strides = [1, 1]} : vector<16x32xf32> to vector<1x32xf32>
    %cst_12 = arith.constant -1.000000e+30 : f32
    %75 = vector.shape_cast %73 : vector<8x1xi1> to vector<8x1xi1>
    %76 = vector.broadcast %75 : vector<8x1xi1> to vector<8x32xi1>
    %77 = vector.shape_cast %74 : vector<1x32xf32> to vector<1x32xf32>
    %78 = vector.broadcast %77 : vector<1x32xf32> to vector<8x32xf32>
    %79 = vector.broadcast %cst_12 : f32 to vector<8x32xf32>
    %80 = arith.select %76, %78, %79 : vector<8x32xi1>, vector<8x32xf32>
    %81 = arith.maximumf %67, %80 : vector<8x32xf32>
    %c5_i32 = arith.constant 5 : i32
    %82 = arith.addi %10, %c5_i32 : i32
    %83 = vector.broadcast %82 : i32 to vector<8x1xi32>
    %84 = arith.cmpi sle, %2, %83 : vector<8x1xi32>
    %85 = vector.broadcast %82 : i32 to vector<8x1xi32>
    %86 = arith.cmpi sle, %85, %3 : vector<8x1xi32>
    %87 = arith.andi %84, %86 : vector<8x1xi1>
    %88 = vector.extract_strided_slice %9 {offsets = [5, 0], sizes = [1, 32], strides = [1, 1]} : vector<16x32xf32> to vector<1x32xf32>
    %cst_13 = arith.constant -1.000000e+30 : f32
    %89 = vector.shape_cast %87 : vector<8x1xi1> to vector<8x1xi1>
    %90 = vector.broadcast %89 : vector<8x1xi1> to vector<8x32xi1>
    %91 = vector.shape_cast %88 : vector<1x32xf32> to vector<1x32xf32>
    %92 = vector.broadcast %91 : vector<1x32xf32> to vector<8x32xf32>
    %93 = vector.broadcast %cst_13 : f32 to vector<8x32xf32>
    %94 = arith.select %90, %92, %93 : vector<8x32xi1>, vector<8x32xf32>
    %95 = arith.maximumf %81, %94 : vector<8x32xf32>
    %c6_i32 = arith.constant 6 : i32
    %96 = arith.addi %10, %c6_i32 : i32
    %97 = vector.broadcast %96 : i32 to vector<8x1xi32>
    %98 = arith.cmpi sle, %2, %97 : vector<8x1xi32>
    %99 = vector.broadcast %96 : i32 to vector<8x1xi32>
    %100 = arith.cmpi sle, %99, %3 : vector<8x1xi32>
    %101 = arith.andi %98, %100 : vector<8x1xi1>
    %102 = vector.extract_strided_slice %9 {offsets = [6, 0], sizes = [1, 32], strides = [1, 1]} : vector<16x32xf32> to vector<1x32xf32>
    %cst_14 = arith.constant -1.000000e+30 : f32
    %103 = vector.shape_cast %101 : vector<8x1xi1> to vector<8x1xi1>
    %104 = vector.broadcast %103 : vector<8x1xi1> to vector<8x32xi1>
    %105 = vector.shape_cast %102 : vector<1x32xf32> to vector<1x32xf32>
    %106 = vector.broadcast %105 : vector<1x32xf32> to vector<8x32xf32>
    %107 = vector.broadcast %cst_14 : f32 to vector<8x32xf32>
    %108 = arith.select %104, %106, %107 : vector<8x32xi1>, vector<8x32xf32>
    %109 = arith.maximumf %95, %108 : vector<8x32xf32>
    %c7_i32 = arith.constant 7 : i32
    %110 = arith.addi %10, %c7_i32 : i32
    %111 = vector.broadcast %110 : i32 to vector<8x1xi32>
    %112 = arith.cmpi sle, %2, %111 : vector<8x1xi32>
    %113 = vector.broadcast %110 : i32 to vector<8x1xi32>
    %114 = arith.cmpi sle, %113, %3 : vector<8x1xi32>
    %115 = arith.andi %112, %114 : vector<8x1xi1>
    %116 = vector.extract_strided_slice %9 {offsets = [7, 0], sizes = [1, 32], strides = [1, 1]} : vector<16x32xf32> to vector<1x32xf32>
    %cst_15 = arith.constant -1.000000e+30 : f32
    %117 = vector.shape_cast %115 : vector<8x1xi1> to vector<8x1xi1>
    %118 = vector.broadcast %117 : vector<8x1xi1> to vector<8x32xi1>
    %119 = vector.shape_cast %116 : vector<1x32xf32> to vector<1x32xf32>
    %120 = vector.broadcast %119 : vector<1x32xf32> to vector<8x32xf32>
    %121 = vector.broadcast %cst_15 : f32 to vector<8x32xf32>
    %122 = arith.select %118, %120, %121 : vector<8x32xi1>, vector<8x32xf32>
    %123 = arith.maximumf %109, %122 : vector<8x32xf32>
    %c8_i32 = arith.constant 8 : i32
    %124 = arith.addi %10, %c8_i32 : i32
    %125 = vector.broadcast %124 : i32 to vector<8x1xi32>
    %126 = arith.cmpi sle, %2, %125 : vector<8x1xi32>
    %127 = vector.broadcast %124 : i32 to vector<8x1xi32>
    %128 = arith.cmpi sle, %127, %3 : vector<8x1xi32>
    %129 = arith.andi %126, %128 : vector<8x1xi1>
    %130 = vector.extract_strided_slice %9 {offsets = [8, 0], sizes = [1, 32], strides = [1, 1]} : vector<16x32xf32> to vector<1x32xf32>
    %cst_16 = arith.constant -1.000000e+30 : f32
    %131 = vector.shape_cast %129 : vector<8x1xi1> to vector<8x1xi1>
    %132 = vector.broadcast %131 : vector<8x1xi1> to vector<8x32xi1>
    %133 = vector.shape_cast %130 : vector<1x32xf32> to vector<1x32xf32>
    %134 = vector.broadcast %133 : vector<1x32xf32> to vector<8x32xf32>
    %135 = vector.broadcast %cst_16 : f32 to vector<8x32xf32>
    %136 = arith.select %132, %134, %135 : vector<8x32xi1>, vector<8x32xf32>
    %137 = arith.maximumf %123, %136 : vector<8x32xf32>
    %c9_i32 = arith.constant 9 : i32
    %138 = arith.addi %10, %c9_i32 : i32
    %139 = vector.broadcast %138 : i32 to vector<8x1xi32>
    %140 = arith.cmpi sle, %2, %139 : vector<8x1xi32>
    %141 = vector.broadcast %138 : i32 to vector<8x1xi32>
    %142 = arith.cmpi sle, %141, %3 : vector<8x1xi32>
    %143 = arith.andi %140, %142 : vector<8x1xi1>
    %144 = vector.extract_strided_slice %9 {offsets = [9, 0], sizes = [1, 32], strides = [1, 1]} : vector<16x32xf32> to vector<1x32xf32>
    %cst_17 = arith.constant -1.000000e+30 : f32
    %145 = vector.shape_cast %143 : vector<8x1xi1> to vector<8x1xi1>
    %146 = vector.broadcast %145 : vector<8x1xi1> to vector<8x32xi1>
    %147 = vector.shape_cast %144 : vector<1x32xf32> to vector<1x32xf32>
    %148 = vector.broadcast %147 : vector<1x32xf32> to vector<8x32xf32>
    %149 = vector.broadcast %cst_17 : f32 to vector<8x32xf32>
    %150 = arith.select %146, %148, %149 : vector<8x32xi1>, vector<8x32xf32>
    %151 = arith.maximumf %137, %150 : vector<8x32xf32>
    %c10_i32 = arith.constant 10 : i32
    %152 = arith.addi %10, %c10_i32 : i32
    %153 = vector.broadcast %152 : i32 to vector<8x1xi32>
    %154 = arith.cmpi sle, %2, %153 : vector<8x1xi32>
    %155 = vector.broadcast %152 : i32 to vector<8x1xi32>
    %156 = arith.cmpi sle, %155, %3 : vector<8x1xi32>
    %157 = arith.andi %154, %156 : vector<8x1xi1>
    %158 = vector.extract_strided_slice %9 {offsets = [10, 0], sizes = [1, 32], strides = [1, 1]} : vector<16x32xf32> to vector<1x32xf32>
    %cst_18 = arith.constant -1.000000e+30 : f32
    %159 = vector.shape_cast %157 : vector<8x1xi1> to vector<8x1xi1>
    %160 = vector.broadcast %159 : vector<8x1xi1> to vector<8x32xi1>
    %161 = vector.shape_cast %158 : vector<1x32xf32> to vector<1x32xf32>
    %162 = vector.broadcast %161 : vector<1x32xf32> to vector<8x32xf32>
    %163 = vector.broadcast %cst_18 : f32 to vector<8x32xf32>
    %164 = arith.select %160, %162, %163 : vector<8x32xi1>, vector<8x32xf32>
    %165 = arith.maximumf %151, %164 : vector<8x32xf32>
    %c11_i32 = arith.constant 11 : i32
    %166 = arith.addi %10, %c11_i32 : i32
    %167 = vector.broadcast %166 : i32 to vector<8x1xi32>
    %168 = arith.cmpi sle, %2, %167 : vector<8x1xi32>
    %169 = vector.broadcast %166 : i32 to vector<8x1xi32>
    %170 = arith.cmpi sle, %169, %3 : vector<8x1xi32>
    %171 = arith.andi %168, %170 : vector<8x1xi1>
    %172 = vector.extract_strided_slice %9 {offsets = [11, 0], sizes = [1, 32], strides = [1, 1]} : vector<16x32xf32> to vector<1x32xf32>
    %cst_19 = arith.constant -1.000000e+30 : f32
    %173 = vector.shape_cast %171 : vector<8x1xi1> to vector<8x1xi1>
    %174 = vector.broadcast %173 : vector<8x1xi1> to vector<8x32xi1>
    %175 = vector.shape_cast %172 : vector<1x32xf32> to vector<1x32xf32>
    %176 = vector.broadcast %175 : vector<1x32xf32> to vector<8x32xf32>
    %177 = vector.broadcast %cst_19 : f32 to vector<8x32xf32>
    %178 = arith.select %174, %176, %177 : vector<8x32xi1>, vector<8x32xf32>
    %179 = arith.maximumf %165, %178 : vector<8x32xf32>
    %c12_i32 = arith.constant 12 : i32
    %180 = arith.addi %10, %c12_i32 : i32
    %181 = vector.broadcast %180 : i32 to vector<8x1xi32>
    %182 = arith.cmpi sle, %2, %181 : vector<8x1xi32>
    %183 = vector.broadcast %180 : i32 to vector<8x1xi32>
    %184 = arith.cmpi sle, %183, %3 : vector<8x1xi32>
    %185 = arith.andi %182, %184 : vector<8x1xi1>
    %186 = vector.extract_strided_slice %9 {offsets = [12, 0], sizes = [1, 32], strides = [1, 1]} : vector<16x32xf32> to vector<1x32xf32>
    %cst_20 = arith.constant -1.000000e+30 : f32
    %187 = vector.shape_cast %185 : vector<8x1xi1> to vector<8x1xi1>
    %188 = vector.broadcast %187 : vector<8x1xi1> to vector<8x32xi1>
    %189 = vector.shape_cast %186 : vector<1x32xf32> to vector<1x32xf32>
    %190 = vector.broadcast %189 : vector<1x32xf32> to vector<8x32xf32>
    %191 = vector.broadcast %cst_20 : f32 to vector<8x32xf32>
    %192 = arith.select %188, %190, %191 : vector<8x32xi1>, vector<8x32xf32>
    %193 = arith.maximumf %179, %192 : vector<8x32xf32>
    %c13_i32 = arith.constant 13 : i32
    %194 = arith.addi %10, %c13_i32 : i32
    %195 = vector.broadcast %194 : i32 to vector<8x1xi32>
    %196 = arith.cmpi sle, %2, %195 : vector<8x1xi32>
    %197 = vector.broadcast %194 : i32 to vector<8x1xi32>
    %198 = arith.cmpi sle, %197, %3 : vector<8x1xi32>
    %199 = arith.andi %196, %198 : vector<8x1xi1>
    %200 = vector.extract_strided_slice %9 {offsets = [13, 0], sizes = [1, 32], strides = [1, 1]} : vector<16x32xf32> to vector<1x32xf32>
    %cst_21 = arith.constant -1.000000e+30 : f32
    %201 = vector.shape_cast %199 : vector<8x1xi1> to vector<8x1xi1>
    %202 = vector.broadcast %201 : vector<8x1xi1> to vector<8x32xi1>
    %203 = vector.shape_cast %200 : vector<1x32xf32> to vector<1x32xf32>
    %204 = vector.broadcast %203 : vector<1x32xf32> to vector<8x32xf32>
    %205 = vector.broadcast %cst_21 : f32 to vector<8x32xf32>
    %206 = arith.select %202, %204, %205 : vector<8x32xi1>, vector<8x32xf32>
    %207 = arith.maximumf %193, %206 : vector<8x32xf32>
    %c14_i32 = arith.constant 14 : i32
    %208 = arith.addi %10, %c14_i32 : i32
    %209 = vector.broadcast %208 : i32 to vector<8x1xi32>
    %210 = arith.cmpi sle, %2, %209 : vector<8x1xi32>
    %211 = vector.broadcast %208 : i32 to vector<8x1xi32>
    %212 = arith.cmpi sle, %211, %3 : vector<8x1xi32>
    %213 = arith.andi %210, %212 : vector<8x1xi1>
    %214 = vector.extract_strided_slice %9 {offsets = [14, 0], sizes = [1, 32], strides = [1, 1]} : vector<16x32xf32> to vector<1x32xf32>
    %cst_22 = arith.constant -1.000000e+30 : f32
    %215 = vector.shape_cast %213 : vector<8x1xi1> to vector<8x1xi1>
    %216 = vector.broadcast %215 : vector<8x1xi1> to vector<8x32xi1>
    %217 = vector.shape_cast %214 : vector<1x32xf32> to vector<1x32xf32>
    %218 = vector.broadcast %217 : vector<1x32xf32> to vector<8x32xf32>
    %219 = vector.broadcast %cst_22 : f32 to vector<8x32xf32>
    %220 = arith.select %216, %218, %219 : vector<8x32xi1>, vector<8x32xf32>
    %221 = arith.maximumf %207, %220 : vector<8x32xf32>
    %c15_i32 = arith.constant 15 : i32
    %222 = arith.addi %10, %c15_i32 : i32
    %223 = vector.broadcast %222 : i32 to vector<8x1xi32>
    %224 = arith.cmpi sle, %2, %223 : vector<8x1xi32>
    %225 = vector.broadcast %222 : i32 to vector<8x1xi32>
    %226 = arith.cmpi sle, %225, %3 : vector<8x1xi32>
    %227 = arith.andi %224, %226 : vector<8x1xi1>
    %228 = vector.extract_strided_slice %9 {offsets = [15, 0], sizes = [1, 32], strides = [1, 1]} : vector<16x32xf32> to vector<1x32xf32>
    %cst_23 = arith.constant -1.000000e+30 : f32
    %229 = vector.shape_cast %227 : vector<8x1xi1> to vector<8x1xi1>
    %230 = vector.broadcast %229 : vector<8x1xi1> to vector<8x32xi1>
    %231 = vector.shape_cast %228 : vector<1x32xf32> to vector<1x32xf32>
    %232 = vector.broadcast %231 : vector<1x32xf32> to vector<8x32xf32>
    %233 = vector.broadcast %cst_23 : f32 to vector<8x32xf32>
    %234 = arith.select %230, %232, %233 : vector<8x32xi1>, vector<8x32xf32>
    %235 = arith.maximumf %221, %234 : vector<8x32xf32>
    %c0_24 = arith.constant 0 : index
    %c0_25 = arith.constant 0 : index
    %236 = vector.load %arg13[%c0_24, %c0_25] : memref<8x32xf32, #tpu.memory_space<vmem>>, vector<8x32xf32>
    tpu.vector_store %arg13[%c0_24, %c0_25], %235 {strides = array<i32>} : memref<8x32xf32, #tpu.memory_space<vmem>>, vector<8x32xf32>,
    %c1_i32_26 = arith.constant 1 : i32
    %237 = arith.cmpi eq, %arg1, %c1_i32_26 : i32
    %238 = arith.extui %237 : i1 to i32
    %c0_i32_27 = arith.constant 0 : i32
    %239 = arith.cmpi ne, %238, %c0_i32_27 : i32
    scf.if %239 {
      %c0_28 = arith.constant 0 : index
      %c0_29 = arith.constant 0 : index
      %240 = vector.load %arg13[%c0_28, %c0_29] : memref<8x32xf32, #tpu.memory_space<vmem>>, vector<8x32xf32>
      %cst_30 = arith.constant -5.000000e+29 : f32
      %241 = vector.broadcast %cst_30 : f32 to vector<8x32xf32>
      %242 = arith.cmpf ole, %240, %241 : vector<8x32xf32>
      %cst_31 = arith.constant 0.000000e+00 : f32
      %243 = vector.broadcast %cst_31 : f32 to vector<8x32xf32>
      %244 = arith.select %242, %243, %240 : vector<8x32xi1>, vector<8x32xf32>
      %245 = arith.truncf %244 : vector<8x32xf32> to vector<8x32xbf16>
      %c0_32 = arith.constant 0 : index
      %c0_33 = arith.constant 0 : index
      %246 = vector.load %arg5[%c0_32, %c0_33] : memref<32x128xbf16, #tpu.memory_space<vmem>>, vector<32x128xbf16>
      %cst_34 = arith.constant dense<0.000000e+00> : vector<8x128xf32>
      %247 = tpu.matmul %245, %246, %cst_34 {dimension_numbers = #tpu.dot_dimension_numbers<[1], [0], [0], [1], [0, 0, 1, 1], [], []>} : vector<8x32xbf16>, vector<32x128xbf16>, vector<8x128xf32> -> vector<8x128xf32>
      %c0_35 = arith.constant 0 : index
      %c0_36 = arith.constant 0 : index
      %248 = vector.load %arg6[%c0_35, %c0_36] : memref<1x128xf32, #tpu.memory_space<vmem>>, vector<1x128xf32>
      %249 = vector.broadcast %248 : vector<1x128xf32> to vector<8x128xf32>
      %250 = arith.addf %247, %249 : vector<8x128xf32>
      %251 = arith.truncf %250 : vector<8x128xf32> to vector<8x128xbf16>
      %c0_37 = arith.constant 0 : index
      %c0_38 = arith.constant 0 : index
      %252 = vector.load %arg7[%c0_37, %c0_38] : memref<128x128xbf16, #tpu.memory_space<vmem>>, vector<128x128xbf16>
      %cst_39 = arith.constant dense<0.000000e+00> : vector<8x128xf32>
      %253 = tpu.matmul %251, %252, %cst_39 {dimension_numbers = #tpu.dot_dimension_numbers<[1], [1], [0], [0], [0, 0, 1, 0], [], []>} : vector<8x128xbf16>, vector<128x128xbf16>, vector<8x128xf32> -> vector<8x128xf32>
      %254 = vector.extract_strided_slice %1 {offsets = [0, 2], sizes = [8, 1], strides = [1, 1]} : vector<8x8xi32> to vector<8x1xi32>
      %255 = tpu.iota {dimensions = array<i32: 1>} : vector<8x8xi32>
      %256 = vector.broadcast %254 : vector<8x1xi32> to vector<8x8xi32>
      %257 = arith.cmpi eq, %255, %256 : vector<8x8xi32>
      %258 = arith.extui %257 : vector<8x8xi1> to vector<8x8xi32>
      %259 = arith.sitofp %258 : vector<8x8xi32> to vector<8x8xf32>
      %260 = arith.truncf %259 : vector<8x8xf32> to vector<8x8xbf16>
      %c0_40 = arith.constant 0 : index
      %c0_41 = arith.constant 0 : index
      %261 = vector.load %arg9[%c0_40, %c0_41] : memref<8x128xbf16, #tpu.memory_space<vmem>>, vector<8x128xbf16>
      %cst_42 = arith.constant dense<0.000000e+00> : vector<8x128xf32>
      %262 = tpu.matmul %260, %261, %cst_42 {dimension_numbers = #tpu.dot_dimension_numbers<[1], [0], [0], [1], [0, 0, 1, 1], [], []>} : vector<8x8xbf16>, vector<8x128xbf16>, vector<8x128xf32> -> vector<8x128xf32>
      %cst_43 = arith.constant 5.000000e-01 : f32
      %263 = vector.broadcast %cst_43 : f32 to vector<8x128xf32>
      %264 = arith.cmpf ogt, %262, %263 : vector<8x128xf32>
      %cst_44 = arith.constant -1.000000e+06 : f32
      %265 = vector.broadcast %cst_44 : f32 to vector<8x128xf32>
      %266 = arith.select %264, %253, %265 : vector<8x128xi1>, vector<8x128xf32>
      %c0_45 = arith.constant 0 : index
      %c0_46 = arith.constant 0 : index
      %c0_47 = arith.constant 0 : index
      %267 = vector.load %arg10[%c0_45, %c0_46, %c0_47] : memref<1x8x128xf32, #tpu.memory_space<vmem>>, vector<1x8x128xf32>
      %268 = vector.shape_cast %267 : vector<1x8x128xf32> to vector<8x128xf32>
      %269 = vector.shape_cast %266 : vector<8x128xf32> to vector<1x8x128xf32>
      tpu.vector_store %arg10[%c0_45, %c0_46, %c0_47], %269 {strides = array<i32>} : memref<1x8x128xf32, #tpu.memory_space<vmem>>, vector<1x8x128xf32>,
      %c0_48 = arith.constant 0 : index
      %c0_49 = arith.constant 0 : index
      %c0_50 = arith.constant 0 : index
      %270 = vector.load %arg4[%c0_48, %c0_49, %c0_50] : memref<1x8x128xbf16, #tpu.memory_space<vmem>>, vector<1x8x128xbf16>
      %271 = vector.shape_cast %270 : vector<1x8x128xbf16> to vector<8x128xbf16>
      %272 = arith.extf %271 : vector<8x128xbf16> to vector<8x128xf32>
      %273 = arith.mulf %272, %272 : vector<8x128xf32>
      %cst_51 = arith.constant dense<0.000000e+00> : vector<8xf32>
      %274 = vector.multi_reduction <add>, %273, %cst_51 [1] : vector<8x128xf32> to vector<8xf32>
      %275 = vector.shape_cast %274 : vector<8xf32> to vector<8x1xf32>
      %c0_52 = arith.constant 0 : index
      %c0_53 = arith.constant 0 : index
      %276 = vector.load %arg8[%c0_52, %c0_53] : memref<1x128xf32, #tpu.memory_space<vmem>>, vector<1x128xf32>
      %277 = vector.broadcast %275 : vector<8x1xf32> to vector<8x128xf32>
      %278 = vector.broadcast %276 : vector<1x128xf32> to vector<8x128xf32>
      %279 = arith.addf %277, %278 : vector<8x128xf32>
      %c0_54 = arith.constant 0 : index
      %c0_55 = arith.constant 0 : index
      %280 = vector.load %arg7[%c0_54, %c0_55] : memref<128x128xbf16, #tpu.memory_space<vmem>>, vector<128x128xbf16>
      %cst_56 = arith.constant dense<0.000000e+00> : vector<8x128xf32>
      %281 = tpu.matmul %271, %280, %cst_56 {dimension_numbers = #tpu.dot_dimension_numbers<[1], [1], [0], [0], [0, 0, 1, 0], [], []>} : vector<8x128xbf16>, vector<128x128xbf16>, vector<8x128xf32> -> vector<8x128xf32>
      %cst_57 = arith.constant 2.000000e+00 : f32
      %282 = vector.broadcast %cst_57 : f32 to vector<8x128xf32>
      %283 = arith.mulf %282, %281 : vector<8x128xf32>
      %284 = arith.subf %279, %283 : vector<8x128xf32>
      %cst_58 = arith.constant 5.000000e-01 : f32
      %285 = vector.broadcast %cst_58 : f32 to vector<8x128xf32>
      %286 = arith.cmpf olt, %284, %285 : vector<8x128xf32>
      %287 = arith.extui %286 : vector<8x128xi1> to vector<8x128xi32>
      %288 = arith.sitofp %287 : vector<8x128xi32> to vector<8x128xf32>
      %c0_59 = arith.constant 0 : index
      %c0_60 = arith.constant 0 : index
      %c0_61 = arith.constant 0 : index
      %289 = vector.load %arg12[%c0_59, %c0_60, %c0_61] : memref<1x8x128xf32, #tpu.memory_space<vmem>>, vector<1x8x128xf32>
      %290 = vector.shape_cast %289 : vector<1x8x128xf32> to vector<8x128xf32>
      %291 = vector.shape_cast %288 : vector<8x128xf32> to vector<1x8x128xf32>
      tpu.vector_store %arg12[%c0_59, %c0_60, %c0_61], %291 {strides = array<i32>} : memref<1x8x128xf32, #tpu.memory_space<vmem>>, vector<1x8x128xf32>,
      %cst_62 = arith.constant dense<0xFF800000> : vector<8xf32>
      %292 = vector.multi_reduction <maximumf>, %266, %cst_62 [1] : vector<8x128xf32> to vector<8xf32>
      %293 = vector.shape_cast %292 : vector<8xf32> to vector<8x1xf32>
      %294 = vector.broadcast %293 : vector<8x1xf32> to vector<8x128xf32>
      %295 = arith.subf %266, %294 : vector<8x128xf32>
      %296 = math.exp %295 : vector<8x128xf32>
      %cst_63 = arith.constant dense<0.000000e+00> : vector<8xf32>
      %297 = vector.multi_reduction <add>, %296, %cst_63 [1] : vector<8x128xf32> to vector<8xf32>
      %298 = vector.shape_cast %297 : vector<8xf32> to vector<8x1xf32>
      %299 = math.log %298 : vector<8x1xf32>
      %300 = vector.broadcast %299 : vector<8x1xf32> to vector<8x128xf32>
      %301 = arith.subf %295, %300 : vector<8x128xf32>
      %302 = arith.mulf %301, %288 : vector<8x128xf32>
      %cst_64 = arith.constant dense<0.000000e+00> : vector<8xf32>
      %303 = vector.multi_reduction <add>, %302, %cst_64 [1] : vector<8x128xf32> to vector<8xf32>
      %304 = vector.shape_cast %303 : vector<8xf32> to vector<8x1xf32>
      %cst_65 = arith.constant 0.000000e+00 : f32
      %305 = vector.broadcast %cst_65 : f32 to vector<8x1xf32>
      %306 = arith.subf %305, %304 : vector<8x1xf32>
      %307 = vector.extract_strided_slice %1 {offsets = [0, 3], sizes = [8, 1], strides = [1, 1]} : vector<8x8xi32> to vector<8x1xi32>
      %308 = arith.sitofp %307 : vector<8x1xi32> to vector<8x1xf32>
      %309 = arith.mulf %306, %308 : vector<8x1xf32>
      %c0_66 = arith.constant 0 : index
      %c0_67 = arith.constant 0 : index
      %c0_68 = arith.constant 0 : index
      %310 = vector.load %arg11[%c0_66, %c0_67, %c0_68] : memref<1x8x1xf32, #tpu.memory_space<vmem>>, vector<1x8x1xf32>
      %311 = vector.shape_cast %310 : vector<1x8x1xf32> to vector<8x1xf32>
      %312 = vector.shape_cast %309 : vector<8x1xf32> to vector<1x8x1xf32>
      tpu.vector_store %arg11[%c0_66, %c0_67, %c0_68], %312 {strides = array<i32>} : memref<1x8x1xf32, #tpu.memory_space<vmem>>, vector<1x8x1xf32>,
    } else {
    }
    return
  }
  func.func @transform_0(%arg0: i32, %arg1: i32) -> (i32, i32, i32) {
    %c0_i32 = arith.constant 0 : i32
    %c0_i32_0 = arith.constant 0 : i32
    return %arg0, %arg1, %c0_i32 : i32, i32, i32
  }
  func.func @transform_1(%arg0: i32, %arg1: i32) -> (i32, i32, i32) {
    %c0_i32 = arith.constant 0 : i32
    %c0_i32_0 = arith.constant 0 : i32
    %c0_i32_1 = arith.constant 0 : i32
    return %arg0, %c0_i32, %c0_i32_0 : i32, i32, i32
  }
  func.func @transform_2(%arg0: i32, %arg1: i32) -> (i32, i32, i32) {
    %c0_i32 = arith.constant 0 : i32
    %c0_i32_0 = arith.constant 0 : i32
    %c0_i32_1 = arith.constant 0 : i32
    return %arg0, %c0_i32, %c0_i32_0 : i32, i32, i32
  }
  func.func @transform_3(%arg0: i32, %arg1: i32) -> (i32, i32) {
    %c0_i32 = arith.constant 0 : i32
    %c0_i32_0 = arith.constant 0 : i32
    %c0_i32_1 = arith.constant 0 : i32
    return %c0_i32, %c0_i32_0 : i32, i32
  }
  func.func @transform_4(%arg0: i32, %arg1: i32) -> (i32, i32) {
    %c0_i32 = arith.constant 0 : i32
    %c0_i32_0 = arith.constant 0 : i32
    %c0_i32_1 = arith.constant 0 : i32
    return %c0_i32, %c0_i32_0 : i32, i32
  }
  func.func @transform_5(%arg0: i32, %arg1: i32) -> (i32, i32) {
    %c0_i32 = arith.constant 0 : i32
    %c0_i32_0 = arith.constant 0 : i32
    %c0_i32_1 = arith.constant 0 : i32
    return %c0_i32, %c0_i32_0 : i32, i32
  }
  func.func @transform_6(%arg0: i32, %arg1: i32) -> (i32, i32) {
    %c0_i32 = arith.constant 0 : i32
    %c0_i32_0 = arith.constant 0 : i32
    %c0_i32_1 = arith.constant 0 : i32
    return %c0_i32, %c0_i32_0 : i32, i32
  }
  func.func @transform_7(%arg0: i32, %arg1: i32) -> (i32, i32) {
    %c0_i32 = arith.constant 0 : i32
    %c0_i32_0 = arith.constant 0 : i32
    %c0_i32_1 = arith.constant 0 : i32
    return %c0_i32, %c0_i32_0 : i32, i32
  }
  func.func @transform_8(%arg0: i32, %arg1: i32) -> (i32, i32, i32) {
    %c0_i32 = arith.constant 0 : i32
    %c0_i32_0 = arith.constant 0 : i32
    %c0_i32_1 = arith.constant 0 : i32
    return %arg0, %c0_i32, %c0_i32_0 : i32, i32, i32
  }
  func.func @transform_9(%arg0: i32, %arg1: i32) -> (i32, i32, i32) {
    %c0_i32 = arith.constant 0 : i32
    %c0_i32_0 = arith.constant 0 : i32
    %c0_i32_1 = arith.constant 0 : i32
    return %arg0, %c0_i32, %c0_i32_0 : i32, i32, i32
  }
  func.func @transform_10(%arg0: i32, %arg1: i32) -> (i32, i32, i32) {
    %c0_i32 = arith.constant 0 : i32
    %c0_i32_0 = arith.constant 0 : i32
    %c0_i32_1 = arith.constant 0 : i32
    return %arg0, %c0_i32, %c0_i32_0 : i32, i32, i32
  }
}

</mosaic_0001>

<bundles_post_ra>
// kernel: tpu_custom_call.1
= control target key start
LH: loop header
LB: loop body
LE: loop exit
PB: predicated region body
PF: predicated region fallthrough
CT: control target
= control target key end

     0   :  { %s2819_s0 = inlined_call_operand.hbm [shape: bf16[2,32,32], index: 0, kind: input, shape index: {}]   ;;  %s2820_s1 = inlined_call_operand.hbm [shape: s32[2,8,8], index: 1, kind: input, shape index: {}]   ;;  %s2821_s2 = inlined_call_operand.hbm [shape: bf16[2,8,128], index: 2, kind: input, shape index: {}]   ;;  %s2822_s3 = inlined_call_operand.hbm [shape: bf16[32,128], index: 3, kind: input, shape index: {}]   ;;  %s2823_s4 = inlined_call_operand.vmem [shape: f32[1,128], index: 4, kind: input, shape index: {}]   ;;  %s2824_s5 = inlined_call_operand.hbm [shape: bf16[128,128], index: 5, kind: input, shape index: {}]   ;;  %s2825_s6 = inlined_call_operand.vmem [shape: f32[1,128], index: 6, kind: input, shape index: {}]   ;;  %s2826_s7 = inlined_call_operand.vmem [shape: bf16[8,128], index: 7, kind: input, shape index: {}]   ;;  %s2827_s8 = inlined_call_operand.hbm [shape: f32[2,8,128], index: 8, kind: output, shape index: {0}]   ;;  %s2828_s9 = inlined_call_operand.vmem [shape: f32[2,8,1], index: 9, kind: output, shape index: {1}]   ;;  %s2829_s10 = inlined_call_operand.hbm [shape: f32[2,8,128], index: 10, kind: output, shape index: {2}]  }
   0x1   :  { %2861 = sst [smem:[#allocation30_spill]] %s2820_s1 }
   0x2   :  { %2862 = sst [smem:[#allocation31_spill]] %s2822_s3 }
   0x3   :  { %2863 = sst [smem:[#allocation32_spill]] %s2823_s4 }
   0x4   :  { %2864 = sst [smem:[#allocation33_spill]] %s2824_s5 }
   0x5   :  { %2865 = sst [smem:[#allocation34_spill]] %s2825_s6 }
   0x6   :  { %2866 = sst [smem:[#allocation35_spill]] %s2826_s7 }
   0x7   :  { %2867 = sst [smem:[#allocation36_spill]] %s2827_s8 }
   0x8   :  { %2868 = sst [smem:[#allocation37_spill]] %s2828_s9 }
   0x9   :  { %2869 = sst [smem:[#allocation38_spill]] %s2829_s10 }
   0xa   :  { %16 = vsyncpa [#allocation4], 0 }
   0xb   :  { %18 = vsyncpa [#allocation4 + $0x1], 0 }
   0xc   :  { %19 = vsyncpa [#allocation7], 0 }
   0xd   :  { %21 = vsyncpa [#allocation7 + $0x1], 0 }
   0xe   :  { %22 = vsyncpa [#allocation10], 0 }
   0xf   :  { %23 = vsyncpa [#allocation5], 0 }
  0x10   :  { %25 = vsyncpa [#allocation5 + $0x1], 0 }
  0x11   :  { %26 = vsyncpa [#allocation14], 0 }
  0x12   :  { %28 = vsyncpa [#allocation14 + $0x1], 0  ;;  %s2167_s13 = smov 0   ;;  %s2169_s14 = smov 0  }
  0x13   :  { %s2171_s15 = smov 0   ;;  %s2173_s16 = smov 0  }
  0x14   :  { %s2175_s17 = smov 0   ;;  %s2177_s18 = smov 0  }
  0x15   :  { %s2179_s19 = smov 0   ;;  %s2181_s20 = smov 0  }
  0x16   :  { %s2183_s21 = smov 0   ;;  %s2185_s22 = smov 0  }
  0x17   :  { %s2187_s23 = smov 0  }
  0x18 LB: > { %2870 = sst [smem:[#allocation20_spill]] %s2054_s13  ;;  %s2221_s24 = sadd.s32 4294967295, %s2094_s23   ;;  %s2094_s23 = sphi %s2187_s23, %s34_s23   ;;  %s2090_s22 = sphi %s2185_s22, %s2938_s22   ;;  %s2086_s21 = sphi %s2183_s21, %s2937_s21   ;;  %s2082_s20 = sphi %s2181_s20, %s2936_s20   ;;  %s2078_s19 = sphi %s2179_s19, %s2935_s19   ;;  %s2074_s18 = sphi %s2177_s18, %s2934_s18   ;;  %s2070_s17 = sphi %s2175_s17, %s2933_s17   ;;  %s2066_s16 = sphi %s2173_s16, %s2932_s16   ;;  %s2062_s15 = sphi %s2171_s15, %s2931_s15   ;;  %s2058_s14 = sphi %s2169_s14, %s2930_s14   ;;  %s2054_s13 = sphi %s2167_s13, %s2928_s13  }
  0x19   : > { %2871 = sst [smem:[#allocation21_spill]] %s2058_s14  ;;  %p68_p0 = scmp.ne.s32.totalorder %s2070_s17, %s2066_s16 }
  0x1a   : > { %2872 = sst [smem:[#allocation22_spill]] %s2078_s19  ;;  %p2832_p1 = scmp.eq.s32.totalorder %s2221_s24, 0 }
  0x1b   : > { %2873 = sst [smem:[#allocation23_spill]] %s2082_s20  ;;  %p1479_p2 = scmp.ge.s32.totalorder %s2094_s23, 1 }
  0x1c   : > { %2874 = sst [smem:[#allocation24_spill]] %s2094_s23  ;;  %p314_p3 = scmp.lt.s32.totalorder %s2094_s23, 5 }
  0x1d   : > { %2875 = sst [smem:[#allocation25_spill]] %s2221_s24  ;;  %p2229_p4 = por %p2832_p1, %p68_p0 }
  0x1e   : > { %p2233_p5 = pnand %p1479_p2, %p314_p3  ;;  %s2096_s27 = smov [#allocation9]  }
  0x1f   : > { %s2876_s25 = scalar_select %p2229_p4, 1, 0 }
  0x20   : > { %s2877_s26 = scalar_select %p2233_p5, 1, 0 }
  0x21   : > { %s326_s28 = sshll.u32 %s2096_s27, 4  ;;  %p1632_p6 = pneg %p2233_p5  ;;  %s327_s28 = int_to_ptr.vmem [resolvable:$true] %s326_s28 }
  0x22   : > { %s2879_s3 = sld [smem:[#allocation31_spill]] }
  0x23   : > { %p2241_p7 = pnand %p1632_p6, %p2832_p1 }
  0x25   : > { %p2835_p9 = pneg %p2241_p7 }
  0x28   : > { %s1786_s12 = scalar_lea.hbm %s2879_s3, 256 }
  0x29   : > { %p1787_p8 = scmp.ne.s32.totalorder %s2879_s3, %s1786_s12  ;;  %p1793_p12 = scmp.lt.u32.totalorder %s1786_s12, %s2879_s3 }
  0x2b   : > { %p1789_p10 = pnand %p2835_p9, %p1787_p8 }
  0x2d   : > { %p1790_p11 = pneg %p1789_p10 }
  0x2f   : > { %p1795_p13 = pnand %p1793_p12, %p1790_p11 }
  0x31   : > { %1798 = shalt.err (!%p1795_p13)
}
  0x32   : > { %s1799_s30 = scalar_lea.vmem %s327_s28, 256  ;;  %p1807_p6 = scmp.lt.s32.totalorder %s327_s28, %s327_s28 }
  0x33   : > { %p1800_p0 = scmp.ne.s32.totalorder %s327_s28, %s1799_s30  ;;  %p1808_p1 = scmp.lt.s32.totalorder %s1799_s30, %s1799_s30 }
  0x35   : > { %p1802_p2 = pnand %p1800_p0, %p2835_p9  ;;  %p1809_p4 = por %p1808_p1, %p1807_p6 }
  0x37   : > { %p1803_p3 = pneg %p1802_p2 }
  0x39   : > { %p1810_p5 = pnand %p1809_p4, %p1803_p3 }
  0x3b   : > { %1813 = shalt.err (!%p1810_p5)
}
  0x3c   : > { %s2836_s10 = smov 64   ;;  %s2838_s8 = smov 4  }
  0x3d   : > { %1635 = dma.hbm_to_vmem [thread:$0]  (!%p2241_p7), %s2879_s3, 256, %s327_s28, [#allocation10], %s2836_s10, %s2836_s10, %s2838_s8  }
  0x3e   : > { %s1478_s16 = sadd.s32 4294967294, %s2094_s23   ;;  %p62_p1 = scmp.ne.s32.totalorder %s2074_s18, %s2070_s17 }
  0x3f   : > { %p63_p4 = scmp.eq.s32.totalorder %s2094_s23, 0  ;;  %p88_p5 = scmp.ne.s32.totalorder %s2062_s15, %s2058_s14 }
  0x40   : > { %p94_p8 = scmp.ne.s32.totalorder %s2058_s14, %s2054_s13  ;;  %p249_p11 = scmp.eq.s32.totalorder %s2221_s24, 3 }
  0x41   : > { %p64_p10 = por %p63_p4, %p62_p1  ;;  %p2281_p12 = por %p88_p5, %p63_p4 }
  0x42   : > { %p2881_p13 = scmp.eq.s32.totalorder %s2221_s24, 0  ;;  %p2291_p2 = por %p249_p11, %p88_p5 }
  0x43   : > { %p255_p3 = scmp.eq.s32.totalorder %s1478_s16, 3  ;;  %p1658_p6 = scmp.lt.s32.totalorder %s2094_s23, 4 }
  0x44   : > { %p2287_p0 = por %p94_p8, %p2881_p13  ;;  %s385_s12 = sand.u32 1, %s2094_s23  }
  0x45   : > { %s2884_s28 = scalar_select %p2291_p2, 1, 0 }
  0x46   : > { %s2882_s11 = scalar_select %p2287_p0, 1, 0 }
  0x47   : > { %2885 = sst [smem:[#allocation27_spill]] %s2884_s28  ;;  %p2297_p9 = por %p255_p3, %p94_p8 }
  0x48   : > { %2883 = sst [smem:[#allocation26_spill]] %s2882_s11  ;;  %p2301_p1 = pnand %p1658_p6, %p64_p10 }
  0x49   : > { %s2886_s30 = scalar_select %p2297_p9, 1, 0 }
  0x4a   : > { %s2888_s27 = scalar_select %p2301_p1, 1, 0 }
  0x4b   : > { %2887 = sst [smem:[#allocation28_spill]] %s2886_s30  ;;  %s387_s10 = sand.u32 1, %s2062_s15  }
  0x4c   : > { %s1487_s8 = sshll.u32 %s387_s10, 3  ;;  %s1488_s3 = sshll.u32 %s2090_s22, 7 }
  0x4d   : > { %s2889_s1 = sld [smem:[#allocation30_spill]]  ;;  %s389_s16 = scalar_lea.vmem [#allocation6], %s1487_s8 }
  0x4e   : > { %s396_s23 = sshll.u32 %s389_s16, 4  ;;  %p2316_p4 = pnand %p1658_p6, %p2281_p12  ;;  %s2312_s23 = int_to_ptr.vmem [resolvable:$true] %s396_s23 }
  0x4f   : > { %s2320_s28 = sshll.u32 %s387_s10, 2  ;;  %s2099_s4 = smov [#allocation11]  }
  0x50   : > { %s2890_s30 = scalar_select %p2316_p4, 1, 0 }
  0x51   : > { %s2324_s13 = scalar_lea.sflag [#allocation7], %s385_s12  ;;  %p2850_p8 = pneg %p2316_p4 }
  0x53   : > { %s2310_s7 = scalar_lea.hbm %s2889_s1, %s1488_s3  ;;  %s2322_s3 = sshll.u32 %s2099_s4, 4  ;;  %s343_s3 = int_to_ptr.vmem [resolvable:$true] %s2322_s3 }
  0x54   : > { %s1814_s19 = scalar_lea.hbm %s2310_s7, 128  ;;  %s1819_s16 = scalar_lea.hbm %s2889_s1, 256 }
  0x55   : > { %p1815_p5 = scmp.ne.s32.totalorder %s2310_s7, %s1814_s19  ;;  %p1820_p12 = scmp.lt.u32.totalorder %s2310_s7, %s2889_s1 }
  0x56   : > { %p1821_p13 = scmp.lt.u32.totalorder %s1819_s16, %s1814_s19  ;;  %p1823_p6 = scmp.lt.u32.totalorder %s1814_s19, %s2310_s7 }
  0x57   : > { %p1817_p10 = pnand %p2850_p8, %p1815_p5 }
  0x58   : > { %p1822_p3 = por %p1821_p13, %p1820_p12 }
  0x59   : > { %p1818_p11 = pneg %p1817_p10 }
  0x5a   : > { %p1824_p9 = por %p1823_p6, %p1822_p3 }
  0x5c   : > { %p1825_p2 = pnand %p1824_p9, %p1818_p11 }
  0x5e   : > { %1828 = shalt.err (!%p1825_p2)
}
  0x5f   : > { %s1829_s12 = scalar_lea.vmem %s2312_s23, 128  ;;  %s2100_s4 = smov [#allocation6]  }
  0x60   : > { %p1830_p5 = scmp.ne.s32.totalorder %s2312_s23, %s1829_s12  ;;  %s1834_s6 = sshll.u32 %s2100_s4, 4  ;;  %s1835_s6 = int_to_ptr.vmem [resolvable:$false] %s1834_s6 }
  0x61   : > { %s1836_s9 = scalar_lea.vmem %s1835_s6, 256  ;;  %p1837_p1 = scmp.lt.s32.totalorder %s2312_s23, %s1835_s6 }
  0x62   : > { %p1832_p10 = pnand %p1830_p5, %p2850_p8  ;;  %p1838_p12 = scmp.lt.s32.totalorder %s1836_s9, %s1829_s12 }
  0x64   : > { %p1833_p0 = pneg %p1832_p10  ;;  %p1839_p13 = por %p1838_p12, %p1837_p1 }
  0x66   : > { %p1840_p3 = pnand %p1839_p13, %p1833_p0 }
  0x68   : > { %1843 = shalt.err (!%p1840_p3)
}
  0x69   : > { %1645 = dma.hbm_to_vmem [thread:$0]  (!%p2316_p4), %s2310_s7, 128, %s2312_s23, %s2324_s13  }
  0x6a   : > { %s2891_s5 = sld [smem:[#allocation33_spill]]  ;;  %p2892_p0 = pneg %p2241_p7 }
  0x70   : > { %s1844_s16 = scalar_lea.hbm %s2891_s5, 1024 }
  0x71   : > { %p1845_p9 = scmp.ne.s32.totalorder %s2891_s5, %s1844_s16  ;;  %p1851_p11 = scmp.lt.u32.totalorder %s1844_s16, %s2891_s5 }
  0x73   : > { %p1847_p2 = pnand %p1845_p9, %p2892_p0 }
  0x75   : > { %p1848_p1 = pneg %p1847_p2 }
  0x77   : > { %p1853_p6 = pnand %p1851_p11, %p1848_p1 }
  0x79   : > { %1856 = shalt.err (!%p1853_p6)
}
  0x7a   : > { %s1857_s7 = scalar_lea.vmem %s343_s3, 1024  ;;  %p2893_p10 = pmov %p2892_p0 }
  0x7b   : > { %p1858_p5 = scmp.ne.s32.totalorder %s343_s3, %s1857_s7  ;;  %p1865_p3 = scmp.lt.s32.totalorder %s343_s3, %s343_s3 }
  0x7c   : > { %p1866_p8 = scmp.lt.s32.totalorder %s1857_s7, %s1857_s7 }
  0x7d   : > { %p1860_p12 = pnand %p1858_p5, %p2893_p10 }
  0x7e   : > { %p1867_p4 = por %p1866_p8, %p1865_p3 }
  0x7f   : > { %p1861_p13 = pneg %p1860_p12 }
  0x81   : > { %p1868_p0 = pnand %p1867_p4, %p1861_p13 }
  0x83   : > { %1871 = shalt.err (!%p1868_p0)
}
  0x84   : > { %s2894_s23 = smov 4   ;;  %s2895_s9 = smov 64  }
  0x85   : > { %1638 = dma.hbm_to_vmem [thread:$0]  (!%p2241_p7), %s2891_s5, 1024, %s343_s3, [#allocation10], %s2895_s9, %s2895_s9, %s2894_s23  }
  0x86   : > { %s55_s16 = sadd.s32 1, %s2074_s18  ;;  %s43_s10 = sadd.s32 1, %s2086_s21 }
  0x87   : > { %s362_s4 = sand.u32 1, %s2074_s18   ;;  %p44_p4 = scmp.ge.s32.totalorder %s43_s10, 2 }
  0x88   : > { %s1483_s29 = sshll.u32 %s362_s4, 3  ;;  %s1484_s12 = sshll.u32 %s2086_s21, 1 }
  0x89   : > { %s2940_s10 = smov (%p44_p4, %s43_s10), 0  ;;  %s2896_s6 = sadd.s32 1, %s2090_s22 }
  0x8a   : > { %s2942_s6 = smov (!%p44_p4, %s2896_s6), %s2090_s22  ;;  %s51_s7 = ssub.s32 %s2086_s21, %s2940_s10 }
  0x8b   : > { %p48_p8 = scmp.ge.s32.totalorder %s2942_s6, 2  ;;  %s1485_s19 = sshll.u32 %s2090_s22, 2 }
  0x8c   : > { %s372_s8 = sadd.s32 %s1485_s19, %s1484_s12  ;;  %s366_s3 = scalar_lea.vmem [#allocation3], %s1483_s29 }
  0x8d   : > { %s375_s1 = sshll.u32 %s366_s3, 4  ;;  %s2944_s6 = smov (%p48_p8, %s2942_s6), 0  ;;  %s2390_s1 = int_to_ptr.vmem [resolvable:$true] %s375_s1 }
  0x8e   : > { %2897 = sst [smem:[#allocation29_spill]] %s2944_s6  ;;  %s1486_s5 = sshll.u32 %s372_s8, 6 }
  0x8f   : > { %s50_s20 = ssub.s32 %s2090_s22, %s2944_s6  ;;  %s2397_s24 = scalar_lea.hbm %s2819_s0, %s1486_s5 }
  0x90   : > { %s52_s12 = sor.u32 %s51_s7, %s50_s20  ;;  %p79_p7 = scmp.eq.s32.totalorder %s50_s20, 0 }
  0x91   : > { %p53_p9 = scmp.eq.s32.totalorder %s52_s12, 0  ;;  %s2898_s29 = sadd.s32 1, %s2062_s15 }
  0x92   : > { %s2402_s19 = scalar_select %p79_p7, %s2062_s15, %s2898_s29  }
  0x93   : > { %s2405_s3 = scalar_select %p53_p9, %s2074_s18, %s55_s16  }
  0x94   : > { %s2407_s8 = scalar_lea.sflag [#allocation4], %s362_s4  ;;  %s1872_s6 = scalar_lea.hbm %s2397_s24, 128 }
  0x95   : > { %p1873_p2 = scmp.ne.s32.totalorder %s2397_s24, %s1872_s6  ;;  %p2899_p1 = scmp.ne.s32.totalorder %s2888_s27, 0 }
  0x96   : > { %s1877_s20 = scalar_lea.hbm %s2819_s0, 512  ;;  %p1878_p10 = scmp.lt.u32.totalorder %s2397_s24, %s2819_s0 }
  0x97   : > { %p1874_p11 = pneg %p2899_p1  ;;  %p1879_p12 = scmp.lt.u32.totalorder %s1877_s20, %s1872_s6 }
  0x98   : > { %p1881_p3 = scmp.lt.u32.totalorder %s1872_s6, %s2397_s24 }
  0x99   : > { %p1875_p6 = pnand %p1874_p11, %p1873_p2  ;;  %p1880_p13 = por %p1879_p12, %p1878_p10 }
  0x9b   : > { %p1876_p5 = pneg %p1875_p6  ;;  %p1882_p0 = por %p1881_p3, %p1880_p13 }
  0x9d   : > { %p1883_p4 = pnand %p1882_p0, %p1876_p5 }
  0x9f   : > { %1886 = shalt.err (!%p1883_p4)
}
  0xa0   : > { %s1887_s16 = scalar_lea.vmem %s2390_s1, 128  ;;  %s2101_s4 = smov [#allocation3]  }
  0xa1   : > { %p1888_p8 = scmp.ne.s32.totalorder %s2390_s1, %s1887_s16  ;;  %s1892_s12 = sshll.u32 %s2101_s4, 4  ;;  %s1893_s12 = int_to_ptr.vmem [resolvable:$false] %s1892_s12 }
  0xa2   : > { %s1894_s29 = scalar_lea.vmem %s1893_s12, 256  ;;  %p1895_p2 = scmp.lt.s32.totalorder %s2390_s1, %s1893_s12 }
  0xa3   : > { %p1890_p7 = pnand %p1888_p8, %p1874_p11  ;;  %p1896_p6 = scmp.lt.s32.totalorder %s1894_s29, %s1887_s16 }
  0xa5   : > { %p1891_p9 = pneg %p1890_p7  ;;  %p1897_p10 = por %p1896_p6, %p1895_p2 }
  0xa7   : > { %p1898_p12 = pnand %p1897_p10, %p1891_p9 }
  0xa9   : > { %1901 = shalt.err (!%p1898_p12)
}
  0xaa   : > { %1642 = dma.hbm_to_vmem [thread:$0]  (!%p2899_p1), %s2397_s24, 128, %s2390_s1, %s2407_s8, %s2895_s9, %s2895_s9, %s2894_s23  }
  0xab   : > { %s1490_s6 = sshll.u32 %s2090_s22, 6  ;;  %s407_s5 = scalar_lea.vmem [#allocation8], %s2320_s28 }
  0xac   : > { %s414_s14 = sshll.u32 %s407_s5, 4  ;;  %s412_s7 = scalar_lea.hbm %s2821_s2, %s1490_s6  ;;  %s415_s14 = int_to_ptr.vmem [resolvable:$true] %s414_s14 }
  0xad   : > { %s1902_s16 = scalar_lea.hbm %s412_s7, 64  ;;  %p2900_p5 = scmp.ne.s32.totalorder %s2890_s30, 0 }
  0xae   : > { %p1903_p11 = scmp.ne.s32.totalorder %s412_s7, %s1902_s16  ;;  %s1907_s12 = scalar_lea.hbm %s2821_s2, 128 }
  0xaf   : > { %p2901_p13 = pneg %p2900_p5  ;;  %p1908_p1 = scmp.lt.u32.totalorder %s412_s7, %s2821_s2 }
  0xb0   : > { %p1909_p4 = scmp.lt.u32.totalorder %s1907_s12, %s1902_s16  ;;  %p1911_p7 = scmp.lt.u32.totalorder %s1902_s16, %s412_s7 }
  0xb1   : > { %p1905_p3 = pnand %p1903_p11, %p2901_p13 }
  0xb2   : > { %p1910_p8 = por %p1909_p4, %p1908_p1 }
  0xb3   : > { %p1906_p0 = pneg %p1905_p3 }
  0xb4   : > { %p1912_p9 = por %p1911_p7, %p1910_p8 }
  0xb6   : > { %p1913_p2 = pnand %p1912_p9, %p1906_p0 }
  0xb8   : > { %1916 = shalt.err (!%p1913_p2)
}
  0xb9   : > { %s1917_s24 = scalar_lea.vmem %s415_s14, 64  ;;  %p2902_p10 = pmov %p2901_p13 }
  0xba   : > { %p1918_p6 = scmp.ne.s32.totalorder %s415_s14, %s1917_s24  ;;  %s2102_s28 = smov [#allocation8]  }
  0xbb   : > { %s1922_s23 = sshll.u32 %s2102_s28, 4  ;;  %s1923_s23 = int_to_ptr.vmem [resolvable:$false] %s1922_s23 }
  0xbc   : > { %p1920_p12 = pnand %p1918_p6, %p2902_p10  ;;  %s1924_s9 = scalar_lea.vmem %s1923_s23, 128 }
  0xbd   : > { %p1925_p13 = scmp.lt.s32.totalorder %s415_s14, %s1923_s23  ;;  %p1926_p3 = scmp.lt.s32.totalorder %s1924_s9, %s1917_s24 }
  0xbe   : > { %p1921_p11 = pneg %p1920_p12 }
  0xbf   : > { %p1927_p1 = por %p1926_p3, %p1925_p13 }
  0xc1   : > { %p1928_p4 = pnand %p1927_p1, %p1921_p11 }
  0xc3   : > { %1931 = shalt.err (!%p1928_p4)
}
  0xc4   : > { %1648 = dma.hbm_to_vmem [thread:$0]  (!%p2900_p5), %s412_s7, 64, %s415_s14, %s2324_s13  }
  0xc5   : > { %p2903_p0 = scmp.ne.s32.totalorder %s2877_s26, 0 }
  0xc6   : > { %s425_s8 = sand.u32 (!%p2903_p0), 1, %s2070_s17   ;;  %p2904_p8 = scmp.ne.s32.totalorder (!%p2903_p0), %s2876_s25, 0 }
  0xc7   : > { %423 = sbr.rel (%p2903_p0) target bundleno = 1602 (0x642), region = 52  ;;  %s2461_s6 = sshll.u32 (!%p2903_p0), %s425_s8, 3 }
  0xc8   : > { %s426_s5 = scalar_lea.sflag (!%p2903_p0), [#allocation4], %s425_s8  ;;  %s429_s20 = scalar_lea.vmem (!%p2903_p0), [#allocation3], %s2461_s6 }
  0xce   : > { %2033 = dma.done.wait (%p2904_p8), %s426_s5, 128  }
  0xcf   : > { %2035 = vsyncadd (%p2904_p8), %s426_s5, 4294967168  ;;  %s2905_s11 = sld [smem:[#allocation25_spill]]  ;;  %s2906_s30 = sld [smem:[#allocation21_spill]] }
  0xd0   : > { %s2907_s16 = sld [smem:[#allocation26_spill]] }
  0xd5   : > { %s434_s13 = sand.u32 1, %s2905_s11   ;;  %s2470_s14 = sand.u32 1, %s2906_s30  }
  0xd6   : > { %s2473_s26 = sshll.u32 %s2470_s14, 3  ;;  %s435_s7 = scalar_lea.sflag [#allocation7], %s434_s13 }
  0xd7   : > { %s438_s27 = scalar_lea.vmem [#allocation6], %s2473_s26  ;;  %p2908_p5 = scmp.ne.s32.totalorder %s2907_s16, 0 }
  0xd9   : > { %2037 = dma.done.wait (%p2908_p5), %s435_s7, 192  }
  0xda   : > { %2039 = vsyncadd (%p2908_p5), %s435_s7, 4294967104  ;;  %s1494_s25 = sshll.u32 %s2470_s14, 2  ;;  %p2909_p7 = scmp.eq.s32.totalorder %s2905_s11, 0 }
  0xdb   : > { %s2481_s4 = scalar_lea.vmem [#allocation8], %s1494_s25 }
  0xdc   : > { %2041 = dma.done.wait (%p2909_p7), [#allocation10], 1280   ;;  %p2910_p9 = pmov %p2909_p7 }
  0xdd   : > { %s2911_s12 = sld [smem:[#allocation23_spill]]  ;;  %s2912_s28 = sld [smem:[#allocation37_spill]]  ;;  %v2494_v0 = vld [vmem:[%s438_s27] sm:$0xff] }
  0xde   : > { %2043 = vsyncadd (%p2910_p9), [#allocation10], 4294966016  ;;  %s497_s9 = scalar_lea.vmem [#allocation12], %s2473_s26  ;;  %s510_s8 = scalar_lea.vmem [#allocation13], %s2473_s26 }
  0xdf   : > { %s2913_s5 = sld [smem:[#allocation22_spill]] }
  0xe3   : > { %p512_p2 = scmp.lt.s32.totalorder %s2911_s12, 1 }
  0xe5   : > { %s2946_s12 = smov (!%p512_p2, %s2911_s12), 1  ;;  %p1500_p6 = scmp.ne.s32.totalorder %s2913_s5, 0 }
  0xe6   : > { %s1499_s29 = sshll.u32 %s2946_s12, 3  ;;  %vm522_vm0 = vcmask (!%p1500_p6), 261120   ;;  %v2103_v1 = vmov (!%p1500_p6), -1e+30  }
  0xe7   : > { %s2492_s23 = scalar_lea.vmem %s2912_s28, %s1499_s29  ;;  %521 = sbr.rel (%p1500_p6) target bundleno = 238 (0xee), region = 76  ;;  %523 = vst.msk [vmem:[#allocation2] sm:$0xff] (!%p1500_p6), %vm522_vm0, %v2103_v1 }
  0xee PF: > { %s2914_s11 = sld [smem:[#allocation22_spill]]  ;;  %v2104_v3 = vmov 0   ;;  %s2105_s12 = smov 127  }
  0xef   : > { %1761 = vset.pattern.permute.xlu0 %v2104_v3  ;;  %1762 = vset.pattern.permute.xlu1 %v2104_v3 }
  0xf4   : > { %s2500_s30 = sshll.u32 %s2914_s11, 4  ;;  %p1502_p10 = scmp.ne.s32.totalorder %s2914_s11, 1 }
  0xf5   : > { %v530_v2 = vstv %s2500_s30  ;;  %s569_s16 = sadd.s32 2, %s2500_s30  ;;  %s549_s13 = sadd.s32 1, %s2500_s30 }
  0xf6   : > { %vm532_vm1 = vcmp.le.s32.totalorder %v530_v2, %v2494_v0  ;;  %v2510_v4 = vstv %s569_s16  ;;  %v2512_v5 = vstv %s549_s13  ;;  %s589_s7 = sadd.s32 3, %s2500_s30  ;;  %s629_s27 = sadd.s32 5, %s2500_s30 }
  0xf7   : > { %v533_v6 = vsel %vm532_vm1, 1, %v2104_v3  ;;  %vm572_vm2 = vcmp.le.s32.totalorder %v2510_v4, %v2494_v0  ;;  %vm552_vm3 = vcmp.le.s32.totalorder %v2512_v5, %v2494_v0  ;;  %v2521_v7 = vstv %s589_s7  ;;  %s609_s25 = sadd.s32 4, %s2500_s30  ;;  %s649_s29 = sadd.s32 6, %s2500_s30 }
  0xf8   : > { %534 = vrot.lane.b32.xlu0 %v533_v6, %s2105_s12  ;;  %v573_v8 = vsel %vm572_vm2, 1, %v2104_v3  ;;  %vm592_vm4 = vcmp.le.s32.totalorder %v2521_v7, %v2494_v0  ;;  %v2528_v9 = vstv %s629_s27  ;;  %v553_v10 = vsel %vm552_vm3, 1, %v2104_v3  ;;  %s669_s1 = sadd.s32 7, %s2500_s30  ;;  %s689_s24 = sadd.s32 8, %s2500_s30 }
  0xf9   : > { %574 = vrot.lane.b32.xlu1 %v573_v8, %s2105_s12  ;;  %v2533_v11 = vstv %s609_s25  ;;  %v593_v12 = vsel %vm592_vm4, 1, %v2104_v3  ;;  %vm632_vm6 = vcmp.le.s32.totalorder %v2528_v9, %v2494_v0  ;;  %v2541_v13 = vstv %s649_s29  ;;  %s709_s28 = sadd.s32 9, %s2500_s30  ;;  %s729_s5 = sadd.s32 10, %s2500_s30 }
  0xfa   : > { %vm612_vm5 = vcmp.le.s32.totalorder %v2533_v11, %v2494_v0  ;;  %v2544_v14 = vstv %s669_s1  ;;  %v633_v16 = vsel %vm632_vm6, 1, %v2104_v3  ;;  %vm652_vm7 = vcmp.le.s32.totalorder %v2541_v13, %v2494_v0  ;;  %s749_s16 = sadd.s32 11, %s2500_s30  ;;  %s769_s13 = sadd.s32 12, %s2500_s30 }
  0xfb   : > { %v613_v15 = vsel %vm612_vm5, 1, %v2104_v3  ;;  %vm672_vm8 = vcmp.le.s32.totalorder %v2544_v14, %v2494_v0  ;;  %v2555_v17 = vstv %s689_s24  ;;  %v2558_v18 = vstv %s709_s28  ;;  %s789_s7 = sadd.s32 13, %s2500_s30  ;;  %s809_s27 = sadd.s32 14, %s2500_s30 }
  0xfc   : > { %554 = vrot.lane.b32.xlu0 %v553_v10, %s2105_s12  ;;  %v653_v19 = vsel %vm652_vm7, 1, %v2104_v3  ;;  %v673_v20 = vsel %vm672_vm8, 1, %v2104_v3  ;;  %vm692_vm9 = vcmp.le.s32.totalorder %v2555_v17, %v2494_v0  ;;  %vm712_vm10 = vcmp.le.s32.totalorder %v2558_v18, %v2494_v0  ;;  %s829_s25 = sadd.s32 15, %s2500_s30  ;;  %s2915_s11 = sld [smem:[#allocation35_spill]] (!%p1502_p10) }
  0xfd   : > { %594 = vrot.lane.b32.xlu1 %v593_v12, %s2105_s12  ;;  %v2569_v21 = vstv %s729_s5  ;;  %v2572_v22 = vstv %s749_s16  ;;  %v693_v23 = vsel %vm692_vm9, 1, %v2104_v3  ;;  %v713_v24 = vsel %vm712_vm10, 1, %v2104_v3  ;;  %s2916_s29 = sld [smem:[#allocation32_spill]] (!%p1502_p10)  ;;  %s2917_s24 = sld [smem:[#allocation34_spill]] (!%p1502_p10) }
  0xfe   : > { %vm732_vm11 = vcmp.le.s32.totalorder %v2569_v21, %v2494_v0  ;;  %vm752_vm12 = vcmp.le.s32.totalorder %v2572_v22, %v2494_v0  ;;  %v2583_v25 = vstv %s769_s13  ;;  %v2586_v26 = vstv %s789_s7  ;;  %s2109_s28 = smov (!%p1502_p10), 125  }
  0xff   : > { %v733_v27 = vsel %vm732_vm11, 1, %v2104_v3  ;;  %v753_v28 = vsel %vm752_vm12, 1, %v2104_v3  ;;  %vm772_vm13 = vcmp.le.s32.totalorder %v2583_v25, %v2494_v0  ;;  %vm792_vm14 = vcmp.le.s32.totalorder %v2586_v26, %v2494_v0 }
 0x100   : > { %614 = vrot.lane.b32.xlu0 %v613_v15, %s2105_s12  ;;  %v2597_v29 = vstv %s809_s27  ;;  %v2600_v30 = vstv %s829_s25  ;;  %v773_v31 = vsel %vm772_vm13, 1, %v2104_v3  ;;  %v793_v32 = vsel %vm792_vm14, 1, %v2104_v3  ;;  %v529_v15 = vld [vmem:[#allocation2] sm:$0xff] }
 0x101   : > { %634 = vrot.lane.b32.xlu1 %v633_v16, %s2105_s12  ;;  %vm812_vm15 = vcmp.le.s32.totalorder %v2597_v29, %v2494_v0  ;;  %vm832_vm0 = vcmp.le.s32.totalorder %v2600_v30, %v2494_v0  ;;  %vm531_vm1 = vcmp.le.s32.totalorder %v2494_v0, %v530_v2  ;;  %vm551_vm4 = vcmp.le.s32.totalorder %v2494_v0, %v2512_v5 }
 0x102   : > { %v813_v33 = vsel %vm812_vm15, 1, %v2104_v3  ;;  %v833_v34 = vsel %vm832_vm0, 1, %v2104_v3  ;;  %vm591_vm5 = vcmp.le.s32.totalorder %v2494_v0, %v2521_v7  ;;  %vm571_vm6 = vcmp.le.s32.totalorder %v2494_v0, %v2510_v4  ;;  %v1534_v7 = vld [vmem:[%s429_s20] sm:$0xff]  }
 0x103   : > { %vm611_vm12 = vcmp.le.s32.totalorder %v2494_v0, %v2533_v11  ;;  %vm631_vm14 = vcmp.le.s32.totalorder %v2494_v0, %v2528_v9  ;;  %v543_v5 = vlaneseq  ;;  %v1535_v9 = vunpack.c.l.bf16 %v1534_v7 }
 0x104   : > { %654 = vrot.lane.b32.xlu0 %v653_v19, %s2105_s12 }
 0x105   : > { %674 = vrot.lane.b32.xlu1 %v673_v20, %s2105_s12  ;;  %v2665_v6 = vshrl.u32 %v543_v5, 7 }
 0x107   : > { %v545_v8 = vsub.s32 0, %v2665_v6  ;;  %v565_v10 = vsub.s32 1, %v2665_v6 }
 0x108   : > { %694 = vrot.lane.b32.xlu0 %v693_v23, %s2105_s12 }
 0x109   : > { %714 = vrot.lane.b32.xlu1 %v713_v24, %s2105_s12  ;;  %v546_v12 = vrot.slane %v1535_v9, %v545_v8 }
 0x10c   : > { %734 = vrot.lane.b32.xlu0 %v733_v27, %s2105_s12 }
 0x10d   : > { %754 = vrot.lane.b32.xlu1 %v753_v28, %s2105_s12 }
 0x110   : > { %774 = vrot.lane.b32.xlu0 %v773_v31, %s2105_s12 }
 0x111   : > { %794 = vrot.lane.b32.xlu1 %v793_v32, %s2105_s12 }
 0x114   : > { %814 = vrot.lane.b32.xlu0 %v813_v33, %s2105_s12 }
 0x115   : > { %834 = vrot.lane.b32.xlu1 %v833_v34, %s2105_s12 }
 0x16a   : > { %v535_v35 = vpop.permute.xlu0 %534 }
 0x16b   : > { %vm536_vm2 = vcmp.ne.s32.totalorder %v535_v35, 0  ;;  %v575_v36 = vpop.permute.xlu1 %574  ;;  %v685_v35 = vsub.s32 7, %v2665_v6 }
 0x16c   : > { %vm537_vm3 = vmand %vm531_vm1, %vm536_vm2  ;;  %vm576_vm7 = vcmp.ne.s32.totalorder %v575_v36, 0 }
 0x16d   : > { %v538_v37 = vsel %vm537_vm3, 1, %v2104_v3  ;;  %vm577_vm13 = vmand %vm571_vm6, %vm576_vm7  ;;  %vm651_vm3 = vcmp.le.s32.totalorder %v2494_v0, %v2541_v13  ;;  %v566_v13 = vrot.slane %v1535_v9, %v565_v10 }
 0x16e   : > { %v555_v38 = vpop.permute.xlu0 %554  ;;  %540 = vperm.xlu0 %1761, %v538_v37   ;;  %v578_v44 = vsel %vm577_vm13, 1, %v2104_v3 }
 0x16f   : > { %vm556_vm8 = vcmp.ne.s32.totalorder %v555_v38, 0  ;;  %v595_v39 = vpop.permute.xlu1 %594 }
 0x170   : > { %vm557_vm9 = vmand %vm551_vm4, %vm556_vm8  ;;  %vm596_vm10 = vcmp.ne.s32.totalorder %v595_v39, 0  ;;  %vm671_vm4 = vcmp.le.s32.totalorder %v2494_v0, %v2544_v14  ;;  %v585_v14 = vsub.s32 2, %v2665_v6 }
 0x171   : > { %vm597_vm11 = vmand %vm591_vm5, %vm596_vm10  ;;  %v558_v40 = vsel %vm557_vm9, 1, %v2104_v3  ;;  %vm691_vm9 = vcmp.le.s32.totalorder %v2494_v0, %v2555_v17  ;;  %vm711_vm10 = vcmp.le.s32.totalorder %v2494_v0, %v2558_v18  ;;  %v605_v17 = vsub.s32 3, %v2665_v6 }
 0x172   : > { %560 = vperm.xlu1 %1762, %v558_v40   ;;  %v598_v41 = vsel %vm597_vm11, 1, %v2104_v3  ;;  %v615_v42 = vpop.permute.xlu0 %614  ;;  %v586_v20 = vrot.slane %v1535_v9, %v585_v14 }
 0x173   : > { %v635_v43 = vpop.permute.xlu1 %634  ;;  %600 = vperm.xlu0 %1761, %v598_v41   ;;  %vm616_vm15 = vcmp.ne.s32.totalorder %v615_v42, 0  ;;  %v606_v23 = vrot.slane %v1535_v9, %v605_v17  ;;  %v686_v42 = vrot.slane %v1535_v9, %v685_v35 }
 0x174   : > { %vm636_vm0 = vcmp.ne.s32.totalorder %v635_v43, 0  ;;  %vm617_vm1 = vmand %vm611_vm12, %vm616_vm15  ;;  %vm731_vm15 = vcmp.le.s32.totalorder %v2494_v0, %v2569_v21  ;;  %v625_v21 = vsub.s32 4, %v2665_v6 }
 0x175   : > { %vm637_vm2 = vmand %vm631_vm14, %vm636_vm0  ;;  %v618_v48 = vsel %vm617_vm1, 1, %v2104_v3  ;;  %vm751_vm0 = vcmp.le.s32.totalorder %v2494_v0, %v2572_v22 }
 0x176   : > { %580 = vperm.xlu1 %1762, %v578_v44   ;;  %v638_v45 = vsel %vm637_vm2, 1, %v2104_v3  ;;  %v655_v46 = vpop.permute.xlu0 %654  ;;  %v1536_v44 = vunpack.c.h.bf16 %v1534_v7 }
 0x177   : > { %v675_v47 = vpop.permute.xlu1 %674  ;;  %640 = vperm.xlu0 %1761, %v638_v45   ;;  %vm656_vm5 = vcmp.ne.s32.totalorder %v655_v46, 0 }
 0x178   : > { %vm676_vm6 = vcmp.ne.s32.totalorder %v675_v47, 0  ;;  %vm657_vm7 = vmand %vm651_vm3, %vm656_vm5  ;;  %vm771_vm5 = vcmp.le.s32.totalorder %v2494_v0, %v2583_v25  ;;  %v645_v25 = vsub.s32 5, %v2665_v6 }
 0x179   : > { %vm677_vm8 = vmand %vm671_vm4, %vm676_vm6  ;;  %v658_v52 = vsel %vm657_vm7, 1, %v2104_v3  ;;  %vm791_vm6 = vcmp.le.s32.totalorder %v2494_v0, %v2586_v26 }
 0x17a   : > { %620 = vperm.xlu1 %1762, %v618_v48   ;;  %v678_v49 = vsel %vm677_vm8, 1, %v2104_v3  ;;  %v695_v50 = vpop.permute.xlu0 %694  ;;  %v646_v33 = vrot.slane %v1535_v9, %v645_v25  ;;  %v706_v48 = vrot.slane %v1536_v44, %v545_v8 }
 0x17b   : > { %v715_v51 = vpop.permute.xlu1 %714  ;;  %680 = vperm.xlu0 %1761, %v678_v49   ;;  %vm696_vm11 = vcmp.ne.s32.totalorder %v695_v50, 0 }
 0x17c   : > { %vm716_vm12 = vcmp.ne.s32.totalorder %v715_v51, 0  ;;  %vm697_vm13 = vmand %vm691_vm9, %vm696_vm11  ;;  %vm811_vm11 = vcmp.le.s32.totalorder %v2494_v0, %v2597_v29  ;;  %v626_v29 = vrot.slane %v1535_v9, %v625_v21  ;;  %v726_v51 = vrot.slane %v1536_v44, %v565_v10 }
 0x17d   : > { %vm717_vm14 = vmand %vm711_vm10, %vm716_vm12  ;;  %v698_v56 = vsel %vm697_vm13, 1, %v2104_v3  ;;  %vm831_vm12 = vcmp.le.s32.totalorder %v2494_v0, %v2600_v30  ;;  %v665_v30 = vsub.s32 6, %v2665_v6  ;;  %v806_v6 = vrot.slane %v1536_v44, %v645_v25 }
 0x17e   : > { %660 = vperm.xlu1 %1762, %v658_v52   ;;  %v718_v53 = vsel %vm717_vm14, 1, %v2104_v3  ;;  %v735_v54 = vpop.permute.xlu0 %734 }
 0x17f   : > { %v755_v55 = vpop.permute.xlu1 %754  ;;  %720 = vperm.xlu0 %1761, %v718_v53   ;;  %vm736_vm1 = vcmp.ne.s32.totalorder %v735_v54, 0  ;;  %v666_v39 = vrot.slane %v1535_v9, %v665_v30 }
 0x180   : > { %vm756_vm2 = vcmp.ne.s32.totalorder %v755_v55, 0  ;;  %vm737_vm3 = vmand %vm731_vm15, %vm736_vm1 }
 0x181   : > { %vm757_vm4 = vmand %vm751_vm0, %vm756_vm2  ;;  %v738_v60 = vsel %vm737_vm3, 1, %v2104_v3 }
 0x182   : > { %700 = vperm.xlu1 %1762, %v698_v56   ;;  %v758_v57 = vsel %vm757_vm4, 1, %v2104_v3  ;;  %v775_v58 = vpop.permute.xlu0 %774  ;;  %v746_v56 = vrot.slane %v1536_v44, %v585_v14  ;;  %v846_v14 = vrot.slane %v1536_v44, %v685_v35  ;;  %v1772_v35 = vld [vmem:[#allocation11 + $0x30] sm:$0xff] (!%p1502_p10)  }
 0x183   : > { %v795_v59 = vpop.permute.xlu1 %794  ;;  %760 = vperm.xlu0 %1761, %v758_v57   ;;  %vm776_vm7 = vcmp.ne.s32.totalorder %v775_v58, 0 }
 0x184   : > { %vm796_vm8 = vcmp.ne.s32.totalorder %v795_v59, 0  ;;  %vm777_vm9 = vmand %vm771_vm5, %vm776_vm7  ;;  %v766_v59 = vrot.slane %v1536_v44, %v605_v17 }
 0x185   : > { %vm797_vm10 = vmand %vm791_vm6, %vm796_vm8  ;;  %v778_v1 = vsel %vm777_vm9, 1, %v2104_v3 }
 0x186   : > { %740 = vperm.xlu1 %1762, %v738_v60   ;;  %v798_v61 = vsel %vm797_vm10, 1, %v2104_v3  ;;  %v815_v62 = vpop.permute.xlu0 %814 }
 0x187   : > { %v835_v63 = vpop.permute.xlu1 %834  ;;  %800 = vperm.xlu0 %1761, %v798_v61   ;;  %vm816_vm13 = vcmp.ne.s32.totalorder %v815_v62, 0 }
 0x188   : > { %vm836_vm14 = vcmp.ne.s32.totalorder %v835_v63, 0  ;;  %vm817_vm15 = vmand %vm811_vm11, %vm816_vm13 }
 0x189   : > { %vm837_vm0 = vmand %vm831_vm12, %vm836_vm14  ;;  %v818_v4 = vsel %vm817_vm15, 1, %v2104_v3 }
 0x18a   : > { %780 = vperm.xlu1 %1762, %v778_v1   ;;  %v838_v2 = vsel %vm837_vm0, 1, %v2104_v3  ;;  %v786_v1 = vrot.slane %v1536_v44, %v625_v21  ;;  %v2106_v21 = vmov (!%p1502_p10), 0.0  }
 0x18b   : > { %840 = vperm.xlu0 %1761, %v838_v2   ;;  %1560 = vmatprep.subr.bf16.mxu1 (!%p1502_p10), %v2106_v21 }
 0x18c   : > { %1588 = vmatprep.subr.bf16.mxu0 (!%p1502_p10), %v2106_v21 }
 0x18e   : > { %820 = vperm.xlu1 %1762, %v818_v4  }
 0x1ed   : > { %v541_v11 = vpop.permute.xlu0 %540 }
 0x1ee   : > { %vm542_vm1 = vcmp.eq.s32.totalorder %v541_v11, 1  ;;  %v826_v11 = vrot.slane %v1536_v44, %v665_v30  ;;  %v1767_v30 = vld [vmem:[#allocation11 + $0x8] sm:$0xff] (!%p1502_p10)  }
 0x1ef   : > { %v547_v3 = vsel %vm542_vm1, %v546_v12, -1e+30  ;;  %vm849_vm1 = vcmask 261120  }
 0x1f0   : > { %v548_v22 = vmax.f32 %v529_v15, %v547_v3 }
 0x1f1   : > { %v561_v16 = vpop.permute.xlu1 %560 }
 0x1f2   : > { %vm562_vm2 = vcmp.eq.s32.totalorder %v561_v16, 1  ;;  %v601_v18 = vpop.permute.xlu0 %600 }
 0x1f3   : > { %v567_v19 = vsel %vm562_vm2, %v566_v13, -1e+30  ;;  %vm602_vm3 = vcmp.eq.s32.totalorder %v601_v18, 1  ;;  %vm2107_vm2 = vmmov (!%p1502_p10), 0  }
 0x1f4   : > { %v568_v26 = vmax.f32 %v548_v22, %v567_v19  ;;  %v607_v32 = vsel %vm602_vm3, %v606_v23, -1e+30  ;;  %v1765_v22 = vld [vmem:[#allocation9 + $0x8] sm:$0xff] (!%p1502_p10)   ;;  %1564 = vmatprep.mubr.msk.bf16.mxu1 (!%p1502_p10), %vm2107_vm2, %v2106_v21  ;;  %1590 = vmatprep.mubr.msk.bf16.mxu0 (!%p1502_p10), %vm2107_vm2, %v2106_v21 }
 0x1f5   : > { %v581_v24 = vpop.permute.xlu1 %580 }
 0x1f6   : > { %vm582_vm4 = vcmp.eq.s32.totalorder %v581_v24, 1  ;;  %v641_v27 = vpop.permute.xlu0 %640  ;;  %v2108_v24 = vmov (!%p1502_p10), 2  }
 0x1f7   : > { %v587_v28 = vsel %vm582_vm4, %v586_v20, -1e+30  ;;  %vm642_vm5 = vcmp.eq.s32.totalorder %v641_v27, 1  ;;  %v1764_v20 = vld [vmem:[#allocation9] sm:$0xff] (!%p1502_p10)   ;;  %1763 = vset.pattern.permute.xlu0 (!%p1502_p10), %v2108_v24  ;;  %vm1044_vm4 = vcmask (!%p1502_p10), 1043456  }
 0x1f8   : > { %v588_v31 = vmax.f32 %v568_v26, %v587_v28  ;;  %v647_v41 = vsel %vm642_vm5, %v646_v33, -1e+30  ;;  %1561 = vmatpush3.bf16.msra.mxu1 (!%p1502_p10), %v1764_v20  ;;  %1033 = vperm.xlu0 (!%p1502_p10), %1763, %v2494_v0   ;;  %v1039_v27 = vld [vmem:[%s2915_s11] sm:$0xf] (!%p1502_p10) }
 0x1f9   : > { %v621_v34 = vpop.permute.xlu1 %620  ;;  %1562 = vmatprep.subr.bf16.mxu1 (!%p1502_p10), %v2106_v21  ;;  %v1766_v28 = vld [vmem:[#allocation11] sm:$0xff] (!%p1502_p10)  }
 0x1fa   : > { %v608_v36 = vmax.f32 %v588_v31, %v607_v32  ;;  %vm622_vm6 = vcmp.eq.s32.totalorder %v621_v34, 1  ;;  %v681_v37 = vpop.permute.xlu0 %680  ;;  %v1768_v31 = vld [vmem:[#allocation11 + $0x10] sm:$0xff] (!%p1502_p10)   ;;  %v1769_v32 = vld [vmem:[#allocation11 + $0x18] sm:$0xff] (!%p1502_p10)   ;;  %v1770_v33 = vld [vmem:[#allocation11 + $0x20] sm:$0xff] (!%p1502_p10)  }
 0x1fb   : > { %v627_v38 = vsel %vm622_vm6, %v626_v29, -1e+30  ;;  %vm682_vm7 = vcmp.eq.s32.totalorder %v681_v37, 1  ;;  %v1046_v29 = vsel (!%p1502_p10), %vm1044_vm4, %v1039_v27, 0  ;;  %v1771_v34 = vld [vmem:[#allocation11 + $0x28] sm:$0xff] (!%p1502_p10)   ;;  %v1031_v37 = vand.u32 (!%p1502_p10), 127, %v543_v5 }
 0x1fc   : > { %v628_v40 = vmax.f32 %v608_v36, %v627_v38  ;;  %v687_v50 = vsel %vm682_vm7, %v686_v42, -1e+30  ;;  %1563 = vmatpush3.bf16.msra.mxu1 (!%p1502_p10), %v1765_v22  ;;  %1589 = vmatpush3.bf16.msra.mxu0 (!%p1502_p10), %v1046_v29  ;;  %v1773_v36 = vld [vmem:[#allocation11 + $0x38] sm:$0xff] (!%p1502_p10)   ;;  %vm1040_vm6 = vcmask (!%p1502_p10), 64512  }
 0x1fd   : > { %v661_v43 = vpop.permute.xlu1 %660  ;;  %1568 = vmatprep.subr.bf16.mxu1 (!%p1502_p10), %v2106_v21  ;;  %1594 = vmatprep.subr.bf16.mxu0 (!%p1502_p10), %v2106_v21 }
 0x1fe   : > { %v648_v45 = vmax.f32 %v628_v40, %v647_v41  ;;  %vm662_vm8 = vcmp.eq.s32.totalorder %v661_v43, 1  ;;  %v721_v46 = vpop.permute.xlu0 %720  ;;  %v1503_v41 = vld [vmem:[%s2916_s29] ss:$0 sm:$0xff] (!%p1502_p10) }
 0x1ff   : > { %v667_v47 = vsel %vm662_vm8, %v666_v39, -1e+30  ;;  %vm722_vm9 = vcmp.eq.s32.totalorder %v721_v46, 1 }
 0x200   : > { %v668_v49 = vmax.f32 %v648_v45, %v667_v47  ;;  %v727_v58 = vsel %vm722_vm9, %v726_v51, -1e+30  ;;  %v1774_v47 = vld [vmem:[#allocation11] sm:$0xff] (!%p1502_p10)   ;;  %vm1234_vm9 = vcmask (!%p1502_p10), 7168  }
 0x201   : > { %v701_v52 = vpop.permute.xlu1 %700  ;;  %v1778_v51 = vld [vmem:[#allocation11 + $0x20] sm:$0xff] (!%p1502_p10)  }
 0x202   : > { %v688_v53 = vmax.f32 %v668_v49, %v687_v50  ;;  %vm702_vm10 = vcmp.eq.s32.totalorder %v701_v52, 1  ;;  %v761_v54 = vpop.permute.xlu0 %760  ;;  %v1776_v49 = vld [vmem:[#allocation11 + $0x10] sm:$0xff] (!%p1502_p10)   ;;  %v1777_v50 = vld [vmem:[#allocation11 + $0x18] sm:$0xff] (!%p1502_p10)  }
 0x203   : > { %v707_v55 = vsel %vm702_vm10, %v706_v48, -1e+30  ;;  %vm762_vm11 = vcmp.eq.s32.totalorder %v761_v54, 1  ;;  %v1775_v48 = vld [vmem:[#allocation11 + $0x8] sm:$0xff] (!%p1502_p10)  }
 0x204   : > { %v708_v57 = vmax.f32 %v688_v53, %v707_v55  ;;  %v767_v4 = vsel %vm762_vm11, %v766_v59, -1e+30  ;;  %v1779_v55 = vld [vmem:[#allocation11 + $0x28] sm:$0xff] (!%p1502_p10)  }
 0x205   : > { %v741_v60 = vpop.permute.xlu1 %740  ;;  %v1091_v59 = vld [vmem:[%s2481_s4] sm:$0xf] (!%p1502_p10) }
 0x206   : > { %v728_v61 = vmax.f32 %v708_v57, %v727_v58  ;;  %vm742_vm12 = vcmp.eq.s32.totalorder %v741_v60, 1  ;;  %v801_v62 = vpop.permute.xlu0 %800  ;;  %v1780_v57 = vld [vmem:[#allocation11 + $0x30] sm:$0xff] (!%p1502_p10)   ;;  %v1781_v58 = vld [vmem:[#allocation11 + $0x38] sm:$0xff] (!%p1502_p10)  }
 0x207   : > { %v747_v63 = vsel %vm742_vm12, %v746_v56, -1e+30  ;;  %vm802_vm13 = vcmp.eq.s32.totalorder %v801_v62, 1 }
 0x208   : > { %v748_v2 = vmax.f32 %v728_v61, %v747_v63  ;;  %v807_v13 = vsel %vm802_vm13, %v806_v6, -1e+30 }
 0x209   : > { %v781_v7 = vpop.permute.xlu1 %780 }
 0x20a   : > { %v768_v8 = vmax.f32 %v748_v2, %v767_v4  ;;  %vm782_vm14 = vcmp.eq.s32.totalorder %v781_v7, 1  ;;  %v841_v10 = vpop.permute.xlu0 %840  ;;  %v1092_v7 = vunpack.c.l.bf16 (!%p1502_p10), %v1091_v59 }
 0x20b   : > { %v787_v9 = vsel %vm782_vm14, %v786_v1, -1e+30  ;;  %vm842_vm15 = vcmp.eq.s32.totalorder %v841_v10, 1 }
 0x20c   : > { %v788_v12 = vmax.f32 %v768_v8, %v787_v9  ;;  %v847_v18 = vsel %vm842_vm15, %v846_v14, -1e+30  ;;  %v1093_v9 = vmul.f32 (!%p1502_p10), %v1092_v7, %v1092_v7 }
 0x20d   : > { %v821_v15 = vpop.permute.xlu1 %820 }
 0x20e   : > { %v808_v3 = vmax.f32 %v788_v12, %v807_v13  ;;  %vm822_vm0 = vcmp.eq.s32.totalorder %v821_v15, 1  ;;  %854 = sbr.rel (%p1502_p10) target bundleno = 1551 (0x60f), region = 80  ;;  %v1517_v15 = vld [vmem:[%s2917_s24] ss:$0 sm:$0xff] (!%p1502_p10) }
 0x20f   : > { %v827_v16 = vsel %vm822_vm0, %v826_v11, -1e+30 }
 0x210   : > { %v828_v17 = vmax.f32 %v808_v3, %v827_v16 }
 0x212   : > { %v848_v19 = vmax.f32 %v828_v17, %v847_v18 }
 0x214   : > { %850 = vst.msk [vmem:[#allocation2] sm:$0xff] %vm849_vm1, %v848_v19 }
 0x21b   : > { %v855_v23 = vld [vmem:[#allocation2] sm:$0xff] }
 0x21c   : > { %vm856_vm3 = vcmp.le.f32.partialorder %v855_v23, -5e+29 }
 0x21d   : > { %v857_v25 = vsel %vm856_vm3, 0.0, %v855_v23 }
 0x21e   : > { %v858_v26 = vpack.c.bf16 %v857_v25, %v857_v25  ;;  %v1228_v25 = vcvt.s32.f32 %v2494_v0 }
 0x220   : > { %1565 = vmatmul.mubr.msk.bf16.vlgmr.msra.gmra.mrb[0].mxu1 %vm849_vm1, %v858_v26 }
 0x221   : > { %1584 = vmatprep.mubr.msk.bf16.mxu1 %vm2107_vm2, %v2106_v21  ;;  %1569 = vmatpush3.bf16.xpose.msra.mxu1 %v1766_v28 }
 0x222   : > { %1570 = vmatprep.subr.bf16.mxu1 %v2106_v21 }
 0x229   : > { %1571 = vmatpush3.bf16.xpose.msra.mxu1 %v1767_v30 }
 0x22a   : > { %1572 = vmatprep.subr.bf16.mxu1 %v2106_v21 }
 0x231   : > { %1573 = vmatpush3.bf16.xpose.msra.mxu1 %v1768_v31 }
 0x232   : > { %1574 = vmatprep.subr.bf16.mxu1 %v2106_v21 }
 0x239   : > { %1575 = vmatpush3.bf16.xpose.msra.mxu1 %v1769_v32 }
 0x23a   : > { %1576 = vmatprep.subr.bf16.mxu1 %v2106_v21 }
 0x241   : > { %1577 = vmatpush3.bf16.xpose.msra.mxu1 %v1770_v33 }
 0x242   : > { %1578 = vmatprep.subr.bf16.mxu1 %v2106_v21 }
 0x249   : > { %1579 = vmatpush3.bf16.xpose.msra.mxu1 %v1771_v34 }
 0x24a   : > { %1580 = vmatprep.subr.bf16.mxu1 %v2106_v21 }
 0x251   : > { %1581 = vmatpush3.bf16.xpose.msra.mxu1 %v1772_v35 }
 0x252   : > { %1582 = vmatprep.subr.bf16.mxu1 %v2106_v21 }
 0x259   : > { %1583 = vmatpush3.bf16.xpose.msra.mxu1 %v1773_v36 }
 0x277   : > { %v1034_v38 = vpop.permute.xlu0 %1033 }
 0x278   : > { %vm1035_vm5 = vcmp.eq.s32.totalorder %v1031_v37, %v1034_v38 }
 0x279   : > { %v1515_v39 = vsel %vm1035_vm5, 1.0, %v2106_v21 }
 0x27a   : > { %v1038_v40 = vpack.c.bf16 %v1515_v39, %v1515_v39 }
 0x27c   : > { %1591 = vmatmul.mubr.msk.bf16.vlgmr.msra.gmra.mrb[0].mxu0 %vm1040_vm6, %v1038_v40 }
 0x27d   : > { %1610 = vmatprep.mubr.msk.bf16.mxu0 %vm2107_vm2, %v2106_v21  ;;  %1595 = vmatpush3.bf16.xpose.msra.mxu0 %v1774_v47 }
 0x27e   : > { %1596 = vmatprep.subr.bf16.mxu0 %v2106_v21 }
 0x285   : > { %1597 = vmatpush3.bf16.xpose.msra.mxu0 %v1775_v48 }
 0x286   : > { %1598 = vmatprep.subr.bf16.mxu0 %v2106_v21 }
 0x28d   : > { %1599 = vmatpush3.bf16.xpose.msra.mxu0 %v1776_v49 }
 0x28e   : > { %1600 = vmatprep.subr.bf16.mxu0 %v2106_v21 }
 0x295   : > { %1601 = vmatpush3.bf16.xpose.msra.mxu0 %v1777_v50 }
 0x296   : > { %1602 = vmatprep.subr.bf16.mxu0 %v2106_v21 }
 0x29d   : > { %1603 = vmatpush3.bf16.xpose.msra.mxu0 %v1778_v51 }
 0x29e   : > { %1604 = vmatprep.subr.bf16.mxu0 %v2106_v21 }
 0x2a5   : > { %1605 = vmatpush3.bf16.xpose.msra.mxu0 %v1779_v55 }
 0x2a6   : > { %1606 = vmatprep.subr.bf16.mxu0 %v2106_v21 }
 0x2ad   : > { %1607 = vmatpush3.bf16.xpose.msra.mxu0 %v1780_v57 }
 0x2ae   : > { %1608 = vmatprep.subr.bf16.mxu0 %v2106_v21 }
 0x2b5   : > { %1609 = vmatpush3.bf16.xpose.msra.mxu0 %v1781_v58 }
 0x2bc   : > { %1611 = vmatmul.mubr.bf16.vlgmr.msra.gmra.mrb[4].mxu0 %v1091_v59 }
 0x2f3   : > { %v919_v42 = vpop.f32.mrb[0].mxu1 }
 0x2f4   : > { %v920_v43 = vadd.f32 %v1503_v41, %v919_v42  ;;  %v1566_v44 = vpop.f32.mrb[1].mxu1 }
 0x2f5   : > { %v922_v45 = vpop.f32.mrb[2].mxu1 }
 0x2f6   : > { %v925_v46 = vpack.c.bf16 %v920_v43, %v920_v43  ;;  %v1567_v5 = vpop.f32.mrb[3].mxu1 }
 0x2f8   : > { %1585 = vmatmul.mubr.bf16.vlgmr.msra.gmra.mrb[4].mxu1 %v925_v46 }
 0x34f   : > { %v1082_v52 = vpop.f32.mrb[0].mxu0 }
 0x350   : > { %v1592_v53 = vpop.f32.mrb[1].mxu0  ;;  %vm1088_vm7 = vcmp.gt.f32.partialorder %v1082_v52, 0.5 }
 0x351   : > { %v1085_v54 = vpop.f32.mrb[2].mxu0 }
 0x352   : > { %v1593_v56 = vpop.f32.mrb[3].mxu0 }
 0x38f   : > { %v1202_v10 = vpop.f32.mrb[4].mxu0 }
 0x390   : > { %v1612_v11 = vpop.f32.mrb[5].mxu0  ;;  %v1208_v3 = vmul.f32 2.0, %v1202_v10 }
 0x391   : > { %v1205_v12 = vpop.f32.mrb[6].mxu0 }
 0x392   : > { %v1613_v13 = vpop.f32.mrb[7].mxu0 }
 0x3cb   : > { %v1024_v60 = vpop.f32.mrb[4].mxu1 }
 0x3cc   : > { %v1089_v61 = vsel %vm1088_vm7, %v1024_v60, -1000000.0  ;;  %v1586_v62 = vpop.f32.mrb[5].mxu1 }
 0x3cd   : > { %1090 = vst [vmem:[%s497_s9] sm:$0xff] %v1089_v61  ;;  %1214 = vmax.xlane.f32.xlu0 %v1089_v61  ;;  %v1027_v63 = vpop.f32.mrb[6].mxu1 }
 0x3ce   : > { %v1587_v1 = vpop.f32.mrb[7].mxu1 }
 0x45a   : > { %v1215_v2 = vpop.xlane.xlu0 %1214 }
 0x45b   : > { %v1216_v4 = vsub.f32 %v1089_v61, %v1215_v2 }
 0x45d   : > { %v1217_v6 = vmul.f32 1.442695, %v1216_v4 }
 0x45f   : > { %1782 = vpow2.f32 %v1217_v6 }
 0x469   : > { %v1783_v8 = vpop.eup %1782 }
 0x46a   : > { %1219 = vadd.xlane.f32.xlu1 %v1783_v8 }
 0x46e   : > { %1094 = vadd.xlane.f32.xlu1 %v1093_v9 }
 0x4f7   : > { %v1220_v14 = vpop.xlane.xlu1 %1219 }
 0x4f8   : > { %1784 = vlog2.f32 %v1220_v14 }
 0x4fb   : > { %v1095_v16 = vpop.xlane.xlu1 %1094 }
 0x4fc   : > { %v1103_v17 = vadd.f32 %v1517_v15, %v1095_v16 }
 0x4fe   : > { %v1209_v18 = vsub.f32 %v1103_v17, %v1208_v3 }
 0x500   : > { %vm1210_vm8 = vcmp.lt.f32.partialorder %v1209_v18, 0.5 }
 0x501   : > { %v1526_v19 = vsel %vm1210_vm8, 1.0, %v2106_v21 }
 0x502   : > { %v1785_v20 = vpop.eup %1784  ;;  %1213 = vst [vmem:[%s510_s8] sm:$0xff] %v1526_v19 }
 0x503   : > { %v1222_v22 = vmul.f32 0.6931472, %v1785_v20 }
 0x505   : > { %v1223_v23 = vsub.f32 %v1216_v4, %v1222_v22 }
 0x507   : > { %v1224_v24 = vmul.f32 %v1526_v19, %v1223_v23 }
 0x509   : > { %1225 = vadd.xlane.f32.xlu1 %v1224_v24 }
 0x596   : > { %v1226_v26 = vpop.xlane.xlu1 %1225 }
 0x597   : > { %v1227_v27 = vsub.f32 0.0, %v1226_v26 }
 0x599   : > { %v1229_v28 = vmul.f32 %v1228_v25, %v1227_v27 }
 0x59b   : > { %1231 = vrot.lane.b32.xlu1 %v1229_v28, %s2109_s28 }
 0x60d   : > { %v1232_v29 = vpop.permute.xlu1 %1231 }
 0x60e   : > { %1235 = vst.msk [vmem:[%s2492_s23] sm:$0xff] %vm1234_vm9, %v1232_v29 }
 0x60f PF: > { %s2918_s5 = sld [smem:[#allocation23_spill]]  ;;  %s2919_s16 = sld [smem:[#allocation27_spill]] }
 0x610   : > { %s2920_s25 = sld [smem:[#allocation36_spill]]  ;;  %s1259_s20 = sshll.u32 %s497_s9, 4  ;;  %s1260_s20 = int_to_ptr.vmem [resolvable:$true] %s1259_s20 }
 0x611   : > { %s1237_s11 = scalar_lea.sflag [#allocation5], %s2470_s14  ;;  %s1932_s30 = scalar_lea.vmem %s1260_s20, 128 }
 0x612   : > { %p1933_p12 = scmp.ne.s32.totalorder %s1260_s20, %s1932_s30  ;;  %s2110_s23 = smov [#allocation12]  }
 0x613   : > { %s1936_s12 = sshll.u32 %s2110_s23, 4  ;;  %s1937_s12 = int_to_ptr.vmem [resolvable:$false] %s1936_s12 }
 0x614   : > { %s1938_s29 = scalar_lea.vmem %s1937_s12, 256  ;;  %p1939_p1 = scmp.lt.s32.totalorder %s1260_s20, %s1937_s12 }
 0x615   : > { %s1529_s13 = sshll.u32 %s2918_s5, 7  ;;  %p2921_p11 = scmp.ne.s32.totalorder %s2919_s16, 0 }
 0x616   : > { %s2733_s6 = scalar_lea.hbm %s2920_s25, %s1529_s13  ;;  %p1940_p4 = scmp.lt.s32.totalorder %s1938_s29, %s1932_s30 }
 0x617   : > { %p1934_p13 = pnand %p1933_p12, %p2921_p11 }
 0x618   : > { %p1941_p0 = por %p1940_p4, %p1939_p1 }
 0x619   : > { %p1935_p3 = pneg %p1934_p13 }
 0x61b   : > { %p1942_p8 = pnand %p1941_p0, %p1935_p3 }
 0x61d   : > { %1945 = shalt.err (!%p1942_p8)
}
 0x61e   : > { %s1946_s9 = scalar_lea.hbm %s2733_s6, 128  ;;  %s1950_s24 = scalar_lea.hbm %s2920_s25, 256 }
 0x61f   : > { %p1947_p5 = scmp.ne.s32.totalorder %s2733_s6, %s1946_s9  ;;  %p1951_p2 = scmp.lt.u32.totalorder %s2733_s6, %s2920_s25 }
 0x620   : > { %p1952_p6 = scmp.lt.u32.totalorder %s1950_s24, %s1946_s9  ;;  %p1954_p12 = scmp.lt.u32.totalorder %s1946_s9, %s2733_s6 }
 0x621   : > { %p1948_p7 = pnand %p1947_p5, %p2921_p11 }
 0x622   : > { %p1953_p10 = por %p1952_p6, %p1951_p2 }
 0x623   : > { %p1949_p9 = pneg %p1948_p7 }
 0x624   : > { %p1955_p13 = por %p1954_p12, %p1953_p10 }
 0x626   : > { %p1956_p3 = pnand %p1955_p13, %p1949_p9 }
 0x628   : > { %1959 = shalt.err (!%p1956_p3)
}
 0x629   : > { %1628 = dma.vmem_to_hbm [thread:$0]  (%p2921_p11), %s1260_s20, 128, %s2733_s6, %s1237_s11  }
 0x62a   : > { %s2922_s23 = sld [smem:[#allocation38_spill]]  ;;  %s1275_s4 = sshll.u32 %s510_s8, 4  ;;  %s1276_s4 = int_to_ptr.vmem [resolvable:$true] %s1275_s4 }
 0x62b   : > { %s1246_s9 = scalar_lea.sflag [#allocation14], %s2470_s14  ;;  %s1960_s1 = scalar_lea.vmem %s1276_s4, 128 }
 0x62c   : > { %p1961_p1 = scmp.ne.s32.totalorder %s1276_s4, %s1960_s1  ;;  %s2111_s24 = smov [#allocation13]  }
 0x62d   : > { %s1964_s28 = sshll.u32 %s2111_s24, 4  ;;  %s1965_s28 = int_to_ptr.vmem [resolvable:$false] %s1964_s28 }
 0x62e   : > { %p1962_p4 = pnand %p1961_p1, %p2921_p11  ;;  %s1966_s7 = scalar_lea.vmem %s1965_s28, 256 }
 0x62f   : > { %p1967_p8 = scmp.lt.s32.totalorder %s1276_s4, %s1965_s28  ;;  %p1968_p5 = scmp.lt.s32.totalorder %s1966_s7, %s1960_s1 }
 0x630   : > { %s2923_s12 = smov %s2922_s23  ;;  %s2760_s29 = scalar_lea.hbm %s2922_s23, %s1529_s13 }
 0x631   : > { %p1963_p0 = pneg %p1962_p4  ;;  %p1969_p7 = por %p1968_p5, %p1967_p8 }
 0x633   : > { %p1970_p9 = pnand %p1969_p7, %p1963_p0 }
 0x635   : > { %1973 = shalt.err (!%p1970_p9)
}
 0x636   : > { %s1974_s14 = scalar_lea.hbm %s2760_s29, 128  ;;  %s1978_s5 = scalar_lea.hbm %s2923_s12, 256 }
 0x637   : > { %p1975_p2 = scmp.ne.s32.totalorder %s2760_s29, %s1974_s14  ;;  %p1979_p12 = scmp.lt.u32.totalorder %s2760_s29, %s2923_s12 }
 0x638   : > { %p1980_p13 = scmp.lt.u32.totalorder %s1978_s5, %s1974_s14  ;;  %p1982_p1 = scmp.lt.u32.totalorder %s1974_s14, %s2760_s29 }
 0x639   : > { %p1976_p6 = pnand %p1975_p2, %p2921_p11 }
 0x63a   : > { %p1981_p3 = por %p1980_p13, %p1979_p12 }
 0x63b   : > { %p1977_p10 = pneg %p1976_p6 }
 0x63c   : > { %p1983_p4 = por %p1982_p1, %p1981_p3 }
 0x63e   : > { %p1984_p0 = pnand %p1983_p4, %p1977_p10 }
 0x640   : > { %1987 = shalt.err (!%p1984_p0)
}
 0x641   : > { %1629 = dma.vmem_to_hbm [thread:$0]  (%p2921_p11), %s1276_s4, 128, %s2760_s29, %s1246_s9  }
 0x642 PF: > { %s2924_s20 = sld [smem:[#allocation24_spill]]  ;;  %s2925_s11 = sld [smem:[#allocation20_spill]] }
 0x643   : > { %s2926_s27 = sld [smem:[#allocation28_spill]] }
 0x648   : > { %p1661_p8 = scmp.ge.s32.totalorder %s2924_s20, 2  ;;  %s1287_s30 = sand.u32 1, %s2925_s11  }
 0x649   : > { %p2927_p5 = scmp.ne.s32.totalorder %s2926_s27, 0  ;;  %s1288_s23 = scalar_lea.sflag [#allocation5], %s1287_s30 }
 0x64b   : > { %p1650_p7 = pnand %p1661_p8, %p2927_p5 }
 0x64d   : > { %2045 = dma.done.wait (!%p1650_p7), %s1288_s23, 128  }
 0x64e   : > { %2047 = vsyncadd (!%p1650_p7), %s1288_s23, 4294967168  ;;  %s1304_s1 = scalar_lea.sflag [#allocation14], %s1287_s30 }
 0x64f   : > { %2049 = dma.done.wait (!%p1650_p7), %s1304_s1, 128  }
 0x650   : > { %2051 = vsyncadd (!%p1650_p7), %s1304_s1, 4294967168  ;;  %s34_s23 = sadd.s32 1, %s2924_s20   ;;  %s2928_s13 = sld [smem:[#allocation21_spill]] }
 0x651   : > { %p31_p9 = scmp.ge.s32.totalorder %s34_s23, 6   ;;  %s2929_s29 = sld [smem:[#allocation29_spill]] }
 0x652   : > { %s2930_s14 = smov %s2062_s15  ;;  %s2931_s15 = smov %s2402_s19 }
 0x653   : > { %s2932_s16 = smov %s2070_s17  ;;  %s2933_s17 = smov %s2074_s18 }
 0x654   : > { %s2934_s18 = smov %s2405_s3  ;;  %s2935_s19 = smov %s2086_s21 }
 0x655   : > { %s2936_s20 = smov %s2090_s22  ;;  %s2937_s21 = smov %s2940_s10 }
 0x656   :  { %33 = sbr.rel (!%p31_p9) target bundleno = 24 (0x18), region = 166 }
 0x657   : > { %s2938_s22 = smov %s2929_s29 }
 0x65d   :  { %1309 = vsyncpa [#allocation4], 1 }
 0x65e   :  { %1311 = vsyncpa [#allocation4 + $0x1], 1 }
 0x65f   :  { %1312 = vsyncpa [#allocation7], 1 }
 0x660   :  { %1314 = vsyncpa [#allocation7 + $0x1], 1 }
 0x661   :  { %1315 = vsyncpa [#allocation10], 1 }
 0x662   :  { %1316 = vsyncpa [#allocation5], 1 }
 0x663   :  { %1318 = vsyncpa [#allocation5 + $0x1], 1 }
 0x664   :  { %1319 = vsyncpa [#allocation14], 1 }
 0x665   :  { %1321 = vsyncpa [#allocation14 + $0x1], 1 }

</bundles_post_ra>
